<compile_context>
chip_gen: v5e
topology: v5e:2x2
jax: 0.10.0
libtpu: 0.0.40
codegen_flags: <defaults>
</compile_context>

<pallas_src>
import functools

import jax
import jax.numpy as jnp
from jax import lax
from jax.experimental import pallas as pl
from jax.experimental.pallas import tpu as pltpu


# ---------------------------------------------------------------------------
# Kernel: one image per grid step.  Static loops over phases, output
# sub-tiles and taps; each tap is a static flat-shifted window of the
# VMEM-resident padded image.
#   x_ref  : [Cin, L_x]                 padded, flattened image (compute dtype)
#   w_ref  : [P, Msub^2, 2*Cout_p, Cin] stacked per-phase/per-tap weights
#   b_ref  : [2*Cout_p, 1]              stacked biases (f32)
#   out_ref: [P, Cout, L_out_pad]       phase-major, lane-dense output
# ---------------------------------------------------------------------------
def _glu_convt_kernel(x_ref, w_ref, b_ref, out_ref, *,
                      shifts, n_sub, t_t, cout, cout_p, msub2, approx_gate):
    n_phase = len(shifts)
    bias = b_ref[...].astype(jnp.float32)                    # [2*Cout_p, 1]
    for ph in range(n_phase):
        for st in range(n_sub):
            base = st * t_t
            acc = jnp.zeros((2 * cout_p, t_t), jnp.float32)
            for j in range(msub2):
                sh = shifts[ph][j]                            # static int
                xt = x_ref[:, base + sh: base + sh + t_t]     # [Cin, t_t]
                acc = acc + jnp.dot(w_ref[ph, j], xt,
                                    preferred_element_type=jnp.float32)
            acc = acc + bias                                  # [2*Cout_p, t_t]
            a1 = acc[:cout_p]                                 # sublane-aligned
            a2 = acc[cout_p:]                                 # sublane-aligned
            # sigmoid(a2) = 1 / (1 + exp(-a2)); exp (+ optional approx recip)
            # stay on the EUP, off the VALU critical path.
            gate = pl.reciprocal(1.0 + jnp.exp(-a2), approx=approx_gate)
            res = (a1 * gate)[:cout].astype(out_ref.dtype)
            out_ref[ph, :, base: base + t_t] = res


def glu_conv_transpose2d(x, w1, b1, w2, b2, *, stride, padding,
                         compute_dtype=jnp.bfloat16, out_dtype=None,
                         approx_gate=False):
    """x: [N, Cin, H, W]; w: [Cin, Cout, K, K] (PyTorch ConvTranspose2d); b: [Cout]."""
    N, Cin, H, W = x.shape
    Cin_w, Cout, K, K2 = w1.shape
    assert Cin == Cin_w and K == K2 and w2.shape == w1.shape
    s, p = int(stride), int(padding)
    out_dtype = x.dtype if out_dtype is None else out_dtype

    Hout = (H - 1) * s - 2 * p + K
    Wout = (W - 1) * s - 2 * p + K
    assert Hout >= 1 and Wout >= 1

    Msub = -(-K // s)                 # ceil(K/s): sub-kernel extent per phase
    Hph = -(-Hout // s)               # per-phase output rows (upper bound)
    Wph = -(-Wout // s)
    P = s * s
    M2 = Msub * Msub
    Cout_p = -(-Cout // 8) * 8        # sublane-aligned half height

    # ---- per-phase geometry --------------------------------------------------
    # output row i = s*u + r reads input row  u - pad_ph[r] + mp  for tap mp.
    pad_ph = [Msub - 1 - (r + p) // s for r in range(s)]
    PLh = max(0, max(pad_ph))
    PLw = PLh
    PRh = max(0, Hph + Msub - 1 - min(pad_ph) - H)
    PRw = max(0, Wph + Msub - 1 - min(pad_ph) - W)
    Hpad = H + PLh + PRh
    Wpad = W + PLw + PRw
    L_img = Hpad * Wpad
    L_out = Hph * Wpad                # full padded width per row (garbage cols
                                      # beyond Wph are cropped in the wrapper)

    # flat shift of tap (mp, lp) for phase (r, rc) inside the padded image
    shifts = tuple(
        tuple((PLh - pad_ph[r] + mp) * Wpad + (PLw - pad_ph[rc] + lp)
              for mp in range(Msub) for lp in range(Msub))
        for r in range(s) for rc in range(s))
    shift_max = max(max(t) for t in shifts)

    # ---- sub-tile width (bounded by f32 accumulator vreg pressure) ----------
    t_reg = ((32 << 10) // (8 * Cout_p)) // 128 * 128
    T_t = max(128, min(1024, t_reg))
    T_t = min(T_t, -(-L_out // 128) * 128)
    n_sub = -(-L_out // T_t)
    L_out_pad = n_sub * T_t
    L_x = -(-max(L_img, L_out_pad + shift_max) // 128) * 128

    # ---- inputs: padded + flattened image, stacked weights, stacked bias ----
    xpad = jnp.pad(x, ((0, 0), (0, 0), (PLh, PRh), (PLw, PRw)))
    x_flat = xpad.reshape(N, Cin, L_img)
    x_flat = jnp.pad(x_flat, ((0, 0), (0, 0), (0, L_x - L_img)))
    x_flat = x_flat.astype(compute_dtype)                       # [N, Cin, L_x]

    def tap_w(w, r, rc, mp, lp):
        a, b = (r + p) % s, (rc + p) % s
        kh = a + s * (Msub - 1 - mp)
        kw = b + s * (Msub - 1 - lp)
        if kh < K and kw < K:
            wt = w[:, :, kh, kw].T                               # [Cout, Cin]
        else:
            wt = jnp.zeros((Cout, Cin), w.dtype)
        return jnp.pad(wt, ((0, Cout_p - Cout), (0, 0)))         # [Cout_p, Cin]

    wstk = jnp.stack([
        jnp.stack([
            jnp.concatenate([tap_w(w1, r, rc, mp, lp),
                             tap_w(w2, r, rc, mp, lp)], axis=0)
            for mp in range(Msub) for lp in range(Msub)], axis=0)
        for r in range(s) for rc in range(s)], axis=0
    ).astype(compute_dtype)                                      # [P, M2, 2*Cout_p, Cin]

    bstk = jnp.concatenate([
        jnp.pad(b1, (0, Cout_p - Cout)),
        jnp.pad(b2, (0, Cout_p - Cout)),
    ]).reshape(2 * Cout_p, 1).astype(jnp.float32)

    # ---- VMEM budget (per generation) and compiler params --------------------
    in_b = jnp.dtype(compute_dtype).itemsize
    out_b = jnp.dtype(out_dtype).itemsize
    vmem_need = (2 * Cin * L_x * in_b                      # x block (dbl buffer)
                 + 2 * P * M2 * 2 * Cout_p * Cin * in_b    # weights
                 + 2 * 2 * Cout_p * 4                      # bias
                 + 2 * P * Cout * L_out_pad * out_b)       # output block
    try:
        vmem_cap = int(pltpu.get_tpu_info().vmem_capacity_bytes)
    except Exception:
        vmem_cap = 64 << 20                                 # v7x-safe fallback
    if vmem_need + (4 << 20) > int(0.9 * vmem_cap):
        # TODO(synk): row-tile the resident image (manual halo DMA) for inputs
        # whose whole padded image + per-phase output exceed the VMEM budget.
        raise ValueError(
            f"glu_conv_transpose2d: image too large for whole-image-resident "
            f"kernel (needs {vmem_need} B of VMEM, capacity {vmem_cap} B)")
    vmem_limit = int(min(int(0.9 * vmem_cap), max(vmem_need + (8 << 20), 32 << 20)))

    cost = pl.CostEstimate(
        flops=2 * N * P * M2 * (2 * Cout_p) * Cin * L_out_pad,
        transcendentals=N * P * Cout_p * L_out_pad,
        bytes_accessed=(N * Cin * L_x * in_b
                        + P * M2 * 2 * Cout_p * Cin * in_b
                        + 2 * Cout_p * 4
                        + N * P * Cout * L_out_pad * out_b))

    kernel = functools.partial(
        _glu_convt_kernel, shifts=shifts, n_sub=n_sub, t_t=T_t,
        cout=Cout, cout_p=Cout_p, msub2=M2, approx_gate=approx_gate)

    grid_spec = pltpu.PrefetchScalarGridSpec(
        num_scalar_prefetch=0,
        grid=(N,),
        in_specs=[
            pl.BlockSpec((pl.Squeezed(), Cin, L_x), lambda n: (n, 0, 0)),
            pl.BlockSpec((P, M2, 2 * Cout_p, Cin), lambda n: (0, 0, 0, 0)),
            pl.BlockSpec((2 * Cout_p, 1), lambda n: (0, 0)),
        ],
        out_specs=pl.BlockSpec((pl.Squeezed(), P, Cout, L_out_pad),
                               lambda n: (n, 0, 0, 0)),
    )

    out_ph = pl.pallas_call(
        kernel,
        out_shape=jax.ShapeDtypeStruct((N, P, Cout, L_out_pad), out_dtype),
        grid_spec=grid_spec,
        compiler_params=pltpu.CompilerParams(
            dimension_semantics=("parallel",),
            vmem_limit_bytes=vmem_limit),
        cost_estimate=cost,
    )(x_flat, wstk, bstk)

    # ---- depth-to-space: interleave phases back to NCHW and crop -------------
    o = out_ph[:, :, :, :L_out].reshape(N, s, s, Cout, Hph, Wpad)
    o = o[..., :Wph]                               # [N, r, rc, Cout, Hph, Wph]
    o = o.transpose(0, 3, 4, 1, 5, 2)              # [N, Cout, Hph, r, Wph, rc]
    o = o.reshape(N, Cout, Hph * s, Wph * s)
    return o[:, :, :Hout, :Wout]


# ---------------------------------------------------------------------------
# Pure-JAX reference (XLA transposed-conv path) for validation.
# ---------------------------------------------------------------------------
def _reference(x, w1, b1, w2, b2, *, stride, padding):
    K = w1.shape[2]
    pad = K - 1 - padding

    def convt(w, b):
        wc = jnp.flip(w, axis=(2, 3)).transpose(1, 0, 2, 3)    # [Cout, Cin, K, K]
        y = lax.conv_general_dilated(
            x, wc, window_strides=(1, 1),
            padding=[(pad, pad), (pad, pad)],
            lhs_dilation=(stride, stride),
            dimension_numbers=('NCHW', 'OIHW', 'NCHW'))
        return y + b.reshape(1, -1, 1, 1)

    return convt(w1, b1) * jax.nn.sigmoid(convt(w2, b2))


if __name__ == "__main__":
    def run_case(N, Cin, Cout, H, W, K, stride, padding, seed):
        key = jax.random.PRNGKey(seed)
        k1, k2, k3, k4, k5 = jax.random.split(key, 5)
        bound = 1.0 / float(Cout * K * K) ** 0.5
        x = jax.random.normal(k1, (N, Cin, H, W), jnp.float32)
        w1 = jax.random.uniform(k2, (Cin, Cout, K, K), jnp.float32, -bound, bound)
        w2 = jax.random.uniform(k3, (Cin, Cout, K, K), jnp.float32, -bound, bound)
        b1 = jax.random.uniform(k4, (Cout,), jnp.float32, -bound, bound)
        b2 = jax.random.uniform(k5, (Cout,), jnp.float32, -bound, bound)

        Hout = (H - 1) * stride - 2 * padding + K
        Wout = (W - 1) * stride - 2 * padding + K
        ref = _reference(x, w1, b1, w2, b2, stride=stride, padding=padding)
        assert ref.shape == (N, Cout, Hout, Wout)

        for dt, tol in ((jnp.float32, 1e-3), (jnp.bfloat16, 3e-2)):
            out = glu_conv_transpose2d(x, w1, b1, w2, b2, stride=stride,
                                       padding=padding, compute_dtype=dt)
            out = jax.block_until_ready(out)
            assert out.shape == ref.shape, (out.shape, ref.shape)
            err = float(jnp.max(jnp.abs(out - ref)))
            assert err < tol, (str(dt), err)

    # batch=2, channels 4->8, spatial 16x16, kernel=4, stride=2, pad=1 -> 2x8x32x32
    run_case(2, 4, 8, 16, 16, 4, 2, 1, seed=0)
    # K % stride != 0, odd output sizes: exercises zero-padded sub-kernels + crop
    run_case(2, 3, 6, 5, 6, 3, 2, 1, seed=1)

    print("KERNEL_OK")
</pallas_src>

<mosaic_0001>
module attributes {stable_mosaic.version = 11 : i64} {
  func.func @_glu_convt_kernel(%arg0: i32, %arg1: memref<1x4x512xf32, #tpu.memory_space<vmem>>, %arg2: memref<4x4x16x4xf32, #tpu.memory_space<vmem>>, %arg3: memref<16x1xf32, #tpu.memory_space<vmem>>, %arg4: memref<1x4x8x384xf32, #tpu.memory_space<vmem>>) attributes {dimension_semantics = [#tpu.dimension_semantics<parallel>], iteration_bounds = array<i64: 2>, scalar_prefetch = 0 : i64, scratch_operands = 0 : i64, tpu.core_type = #tpu.core_type<tc>, window_params = [{transform_indices = @transform_0, window_bounds = array<i64: 1, 4, 512>}, {pipeline_mode = #tpu.pipeline_mode<synchronous>, transform_indices = @transform_1, window_bounds = array<i64: 4, 4, 16, 4>}, {pipeline_mode = #tpu.pipeline_mode<synchronous>, transform_indices = @transform_2, window_bounds = array<i64: 16, 1>}, {transform_indices = @transform_3, window_bounds = array<i64: 1, 4, 8, 384>}]} {
    %c0 = arith.constant 0 : index
    %c0_0 = arith.constant 0 : index
    %0 = vector.load %arg3[%c0, %c0_0] : memref<16x1xf32, #tpu.memory_space<vmem>>, vector<16x1xf32>
    %cst = arith.constant 0.000000e+00 : f32
    %1 = vector.broadcast %cst : f32 to vector<16x384xf32>
    %c0_1 = arith.constant 0 : index
    %c0_2 = arith.constant 0 : index
    %c0_3 = arith.constant 0 : index
    %2 = vector.load %arg1[%c0_1, %c0_2, %c0_3] : memref<1x4x512xf32, #tpu.memory_space<vmem>>, vector<1x4x384xf32>
    %3 = vector.shape_cast %2 : vector<1x4x384xf32> to vector<4x384xf32>
    %c0_4 = arith.constant 0 : index
    %c0_5 = arith.constant 0 : index
    %c0_6 = arith.constant 0 : index
    %c0_7 = arith.constant 0 : index
    %4 = vector.load %arg2[%c0_4, %c0_5, %c0_6, %c0_7] : memref<4x4x16x4xf32, #tpu.memory_space<vmem>>, vector<1x1x16x4xf32>
    %5 = vector.shape_cast %4 : vector<1x1x16x4xf32> to vector<16x4xf32>
    %cst_8 = arith.constant dense<0.000000e+00> : vector<16x384xf32>
    %6 = tpu.matmul %5, %3, %cst_8 {dimension_numbers = #tpu.dot_dimension_numbers<[1], [0], [0], [1], [0, 0, 1, 1], [], []>} : vector<16x4xf32>, vector<4x384xf32>, vector<16x384xf32> -> vector<16x384xf32>
    %7 = arith.addf %1, %6 : vector<16x384xf32>
    %c0_9 = arith.constant 0 : index
    %c0_10 = arith.constant 0 : index
    %c1 = arith.constant 1 : index
    %8 = vector.load %arg1[%c0_9, %c0_10, %c1] : memref<1x4x512xf32, #tpu.memory_space<vmem>>, vector<1x4x384xf32>
    %9 = vector.shape_cast %8 : vector<1x4x384xf32> to vector<4x384xf32>
    %c0_11 = arith.constant 0 : index
    %c1_12 = arith.constant 1 : index
    %c0_13 = arith.constant 0 : index
    %c0_14 = arith.constant 0 : index
    %10 = vector.load %arg2[%c0_11, %c1_12, %c0_13, %c0_14] : memref<4x4x16x4xf32, #tpu.memory_space<vmem>>, vector<1x1x16x4xf32>
    %11 = vector.shape_cast %10 : vector<1x1x16x4xf32> to vector<16x4xf32>
    %cst_15 = arith.constant dense<0.000000e+00> : vector<16x384xf32>
    %12 = tpu.matmul %11, %9, %cst_15 {dimension_numbers = #tpu.dot_dimension_numbers<[1], [0], [0], [1], [0, 0, 1, 1], [], []>} : vector<16x4xf32>, vector<4x384xf32>, vector<16x384xf32> -> vector<16x384xf32>
    %13 = arith.addf %7, %12 : vector<16x384xf32>
    %c0_16 = arith.constant 0 : index
    %c0_17 = arith.constant 0 : index
    %c18 = arith.constant 18 : index
    %14 = vector.load %arg1[%c0_16, %c0_17, %c18] : memref<1x4x512xf32, #tpu.memory_space<vmem>>, vector<1x4x384xf32>
    %15 = vector.shape_cast %14 : vector<1x4x384xf32> to vector<4x384xf32>
    %c0_18 = arith.constant 0 : index
    %c2 = arith.constant 2 : index
    %c0_19 = arith.constant 0 : index
    %c0_20 = arith.constant 0 : index
    %16 = vector.load %arg2[%c0_18, %c2, %c0_19, %c0_20] : memref<4x4x16x4xf32, #tpu.memory_space<vmem>>, vector<1x1x16x4xf32>
    %17 = vector.shape_cast %16 : vector<1x1x16x4xf32> to vector<16x4xf32>
    %cst_21 = arith.constant dense<0.000000e+00> : vector<16x384xf32>
    %18 = tpu.matmul %17, %15, %cst_21 {dimension_numbers = #tpu.dot_dimension_numbers<[1], [0], [0], [1], [0, 0, 1, 1], [], []>} : vector<16x4xf32>, vector<4x384xf32>, vector<16x384xf32> -> vector<16x384xf32>
    %19 = arith.addf %13, %18 : vector<16x384xf32>
    %c0_22 = arith.constant 0 : index
    %c0_23 = arith.constant 0 : index
    %c19 = arith.constant 19 : index
    %20 = vector.load %arg1[%c0_22, %c0_23, %c19] : memref<1x4x512xf32, #tpu.memory_space<vmem>>, vector<1x4x384xf32>
    %21 = vector.shape_cast %20 : vector<1x4x384xf32> to vector<4x384xf32>
    %c0_24 = arith.constant 0 : index
    %c3 = arith.constant 3 : index
    %c0_25 = arith.constant 0 : index
    %c0_26 = arith.constant 0 : index
    %22 = vector.load %arg2[%c0_24, %c3, %c0_25, %c0_26] : memref<4x4x16x4xf32, #tpu.memory_space<vmem>>, vector<1x1x16x4xf32>
    %23 = vector.shape_cast %22 : vector<1x1x16x4xf32> to vector<16x4xf32>
    %cst_27 = arith.constant dense<0.000000e+00> : vector<16x384xf32>
    %24 = tpu.matmul %23, %21, %cst_27 {dimension_numbers = #tpu.dot_dimension_numbers<[1], [0], [0], [1], [0, 0, 1, 1], [], []>} : vector<16x4xf32>, vector<4x384xf32>, vector<16x384xf32> -> vector<16x384xf32>
    %25 = arith.addf %19, %24 : vector<16x384xf32>
    %26 = vector.broadcast %0 : vector<16x1xf32> to vector<16x384xf32>
    %27 = arith.addf %25, %26 : vector<16x384xf32>
    %28 = vector.extract_strided_slice %27 {offsets = [0, 0], sizes = [8, 384], strides = [1, 1]} : vector<16x384xf32> to vector<8x384xf32>
    %29 = vector.extract_strided_slice %27 {offsets = [8, 0], sizes = [8, 384], strides = [1, 1]} : vector<16x384xf32> to vector<8x384xf32>
    %cst_28 = arith.constant 0.000000e+00 : f32
    %30 = vector.broadcast %cst_28 : f32 to vector<8x384xf32>
    %31 = arith.subf %30, %29 : vector<8x384xf32>
    %32 = math.exp %31 : vector<8x384xf32>
    %cst_29 = arith.constant 1.000000e+00 : f32
    %33 = vector.broadcast %cst_29 : f32 to vector<8x384xf32>
    %34 = arith.addf %33, %32 : vector<8x384xf32>
    %35 = tpu.reciprocal %34 : vector<8x384xf32> -> vector<8x384xf32>
    %36 = arith.mulf %28, %35 : vector<8x384xf32>
    %c0_30 = arith.constant 0 : index
    %c0_31 = arith.constant 0 : index
    %c0_32 = arith.constant 0 : index
    %c0_33 = arith.constant 0 : index
    %37 = vector.load %arg4[%c0_30, %c0_31, %c0_32, %c0_33] : memref<1x4x8x384xf32, #tpu.memory_space<vmem>>, vector<1x1x8x384xf32>
    %38 = vector.shape_cast %37 : vector<1x1x8x384xf32> to vector<8x384xf32>
    %39 = vector.shape_cast %36 : vector<8x384xf32> to vector<1x1x8x384xf32>
    tpu.vector_store %arg4[%c0_30, %c0_31, %c0_32, %c0_33], %39 {strides = array<i32>} : memref<1x4x8x384xf32, #tpu.memory_space<vmem>>, vector<1x1x8x384xf32>,
    %cst_34 = arith.constant 0.000000e+00 : f32
    %40 = vector.broadcast %cst_34 : f32 to vector<16x384xf32>
    %c0_35 = arith.constant 0 : index
    %c0_36 = arith.constant 0 : index
    %c1_37 = arith.constant 1 : index
    %41 = vector.load %arg1[%c0_35, %c0_36, %c1_37] : memref<1x4x512xf32, #tpu.memory_space<vmem>>, vector<1x4x384xf32>
    %42 = vector.shape_cast %41 : vector<1x4x384xf32> to vector<4x384xf32>
    %c1_38 = arith.constant 1 : index
    %c0_39 = arith.constant 0 : index
    %c0_40 = arith.constant 0 : index
    %c0_41 = arith.constant 0 : index
    %43 = vector.load %arg2[%c1_38, %c0_39, %c0_40, %c0_41] : memref<4x4x16x4xf32, #tpu.memory_space<vmem>>, vector<1x1x16x4xf32>
    %44 = vector.shape_cast %43 : vector<1x1x16x4xf32> to vector<16x4xf32>
    %cst_42 = arith.constant dense<0.000000e+00> : vector<16x384xf32>
    %45 = tpu.matmul %44, %42, %cst_42 {dimension_numbers = #tpu.dot_dimension_numbers<[1], [0], [0], [1], [0, 0, 1, 1], [], []>} : vector<16x4xf32>, vector<4x384xf32>, vector<16x384xf32> -> vector<16x384xf32>
    %46 = arith.addf %40, %45 : vector<16x384xf32>
    %c0_43 = arith.constant 0 : index
    %c0_44 = arith.constant 0 : index
    %c2_45 = arith.constant 2 : index
    %47 = vector.load %arg1[%c0_43, %c0_44, %c2_45] : memref<1x4x512xf32, #tpu.memory_space<vmem>>, vector<1x4x384xf32>
    %48 = vector.shape_cast %47 : vector<1x4x384xf32> to vector<4x384xf32>
    %c1_46 = arith.constant 1 : index
    %c1_47 = arith.constant 1 : index
    %c0_48 = arith.constant 0 : index
    %c0_49 = arith.constant 0 : index
    %49 = vector.load %arg2[%c1_46, %c1_47, %c0_48, %c0_49] : memref<4x4x16x4xf32, #tpu.memory_space<vmem>>, vector<1x1x16x4xf32>
    %50 = vector.shape_cast %49 : vector<1x1x16x4xf32> to vector<16x4xf32>
    %cst_50 = arith.constant dense<0.000000e+00> : vector<16x384xf32>
    %51 = tpu.matmul %50, %48, %cst_50 {dimension_numbers = #tpu.dot_dimension_numbers<[1], [0], [0], [1], [0, 0, 1, 1], [], []>} : vector<16x4xf32>, vector<4x384xf32>, vector<16x384xf32> -> vector<16x384xf32>
    %52 = arith.addf %46, %51 : vector<16x384xf32>
    %c0_51 = arith.constant 0 : index
    %c0_52 = arith.constant 0 : index
    %c19_53 = arith.constant 19 : index
    %53 = vector.load %arg1[%c0_51, %c0_52, %c19_53] : memref<1x4x512xf32, #tpu.memory_space<vmem>>, vector<1x4x384xf32>
    %54 = vector.shape_cast %53 : vector<1x4x384xf32> to vector<4x384xf32>
    %c1_54 = arith.constant 1 : index
    %c2_55 = arith.constant 2 : index
    %c0_56 = arith.constant 0 : index
    %c0_57 = arith.constant 0 : index
    %55 = vector.load %arg2[%c1_54, %c2_55, %c0_56, %c0_57] : memref<4x4x16x4xf32, #tpu.memory_space<vmem>>, vector<1x1x16x4xf32>
    %56 = vector.shape_cast %55 : vector<1x1x16x4xf32> to vector<16x4xf32>
    %cst_58 = arith.constant dense<0.000000e+00> : vector<16x384xf32>
    %57 = tpu.matmul %56, %54, %cst_58 {dimension_numbers = #tpu.dot_dimension_numbers<[1], [0], [0], [1], [0, 0, 1, 1], [], []>} : vector<16x4xf32>, vector<4x384xf32>, vector<16x384xf32> -> vector<16x384xf32>
    %58 = arith.addf %52, %57 : vector<16x384xf32>
    %c0_59 = arith.constant 0 : index
    %c0_60 = arith.constant 0 : index
    %c20 = arith.constant 20 : index
    %59 = vector.load %arg1[%c0_59, %c0_60, %c20] : memref<1x4x512xf32, #tpu.memory_space<vmem>>, vector<1x4x384xf32>
    %60 = vector.shape_cast %59 : vector<1x4x384xf32> to vector<4x384xf32>
    %c1_61 = arith.constant 1 : index
    %c3_62 = arith.constant 3 : index
    %c0_63 = arith.constant 0 : index
    %c0_64 = arith.constant 0 : index
    %61 = vector.load %arg2[%c1_61, %c3_62, %c0_63, %c0_64] : memref<4x4x16x4xf32, #tpu.memory_space<vmem>>, vector<1x1x16x4xf32>
    %62 = vector.shape_cast %61 : vector<1x1x16x4xf32> to vector<16x4xf32>
    %cst_65 = arith.constant dense<0.000000e+00> : vector<16x384xf32>
    %63 = tpu.matmul %62, %60, %cst_65 {dimension_numbers = #tpu.dot_dimension_numbers<[1], [0], [0], [1], [0, 0, 1, 1], [], []>} : vector<16x4xf32>, vector<4x384xf32>, vector<16x384xf32> -> vector<16x384xf32>
    %64 = arith.addf %58, %63 : vector<16x384xf32>
    %65 = vector.broadcast %0 : vector<16x1xf32> to vector<16x384xf32>
    %66 = arith.addf %64, %65 : vector<16x384xf32>
    %67 = vector.extract_strided_slice %66 {offsets = [0, 0], sizes = [8, 384], strides = [1, 1]} : vector<16x384xf32> to vector<8x384xf32>
    %68 = vector.extract_strided_slice %66 {offsets = [8, 0], sizes = [8, 384], strides = [1, 1]} : vector<16x384xf32> to vector<8x384xf32>
    %cst_66 = arith.constant 0.000000e+00 : f32
    %69 = vector.broadcast %cst_66 : f32 to vector<8x384xf32>
    %70 = arith.subf %69, %68 : vector<8x384xf32>
    %71 = math.exp %70 : vector<8x384xf32>
    %cst_67 = arith.constant 1.000000e+00 : f32
    %72 = vector.broadcast %cst_67 : f32 to vector<8x384xf32>
    %73 = arith.addf %72, %71 : vector<8x384xf32>
    %74 = tpu.reciprocal %73 : vector<8x384xf32> -> vector<8x384xf32>
    %75 = arith.mulf %67, %74 : vector<8x384xf32>
    %c0_68 = arith.constant 0 : index
    %c1_69 = arith.constant 1 : index
    %c0_70 = arith.constant 0 : index
    %c0_71 = arith.constant 0 : index
    %76 = vector.load %arg4[%c0_68, %c1_69, %c0_70, %c0_71] : memref<1x4x8x384xf32, #tpu.memory_space<vmem>>, vector<1x1x8x384xf32>
    %77 = vector.shape_cast %76 : vector<1x1x8x384xf32> to vector<8x384xf32>
    %78 = vector.shape_cast %75 : vector<8x384xf32> to vector<1x1x8x384xf32>
    tpu.vector_store %arg4[%c0_68, %c1_69, %c0_70, %c0_71], %78 {strides = array<i32>} : memref<1x4x8x384xf32, #tpu.memory_space<vmem>>, vector<1x1x8x384xf32>,
    %cst_72 = arith.constant 0.000000e+00 : f32
    %79 = vector.broadcast %cst_72 : f32 to vector<16x384xf32>
    %c0_73 = arith.constant 0 : index
    %c0_74 = arith.constant 0 : index
    %c18_75 = arith.constant 18 : index
    %80 = vector.load %arg1[%c0_73, %c0_74, %c18_75] : memref<1x4x512xf32, #tpu.memory_space<vmem>>, vector<1x4x384xf32>
    %81 = vector.shape_cast %80 : vector<1x4x384xf32> to vector<4x384xf32>
    %c2_76 = arith.constant 2 : index
    %c0_77 = arith.constant 0 : index
    %c0_78 = arith.constant 0 : index
    %c0_79 = arith.constant 0 : index
    %82 = vector.load %arg2[%c2_76, %c0_77, %c0_78, %c0_79] : memref<4x4x16x4xf32, #tpu.memory_space<vmem>>, vector<1x1x16x4xf32>
    %83 = vector.shape_cast %82 : vector<1x1x16x4xf32> to vector<16x4xf32>
    %cst_80 = arith.constant dense<0.000000e+00> : vector<16x384xf32>
    %84 = tpu.matmul %83, %81, %cst_80 {dimension_numbers = #tpu.dot_dimension_numbers<[1], [0], [0], [1], [0, 0, 1, 1], [], []>} : vector<16x4xf32>, vector<4x384xf32>, vector<16x384xf32> -> vector<16x384xf32>
    %85 = arith.addf %79, %84 : vector<16x384xf32>
    %c0_81 = arith.constant 0 : index
    %c0_82 = arith.constant 0 : index
    %c19_83 = arith.constant 19 : index
    %86 = vector.load %arg1[%c0_81, %c0_82, %c19_83] : memref<1x4x512xf32, #tpu.memory_space<vmem>>, vector<1x4x384xf32>
    %87 = vector.shape_cast %86 : vector<1x4x384xf32> to vector<4x384xf32>
    %c2_84 = arith.constant 2 : index
    %c1_85 = arith.constant 1 : index
    %c0_86 = arith.constant 0 : index
    %c0_87 = arith.constant 0 : index
    %88 = vector.load %arg2[%c2_84, %c1_85, %c0_86, %c0_87] : memref<4x4x16x4xf32, #tpu.memory_space<vmem>>, vector<1x1x16x4xf32>
    %89 = vector.shape_cast %88 : vector<1x1x16x4xf32> to vector<16x4xf32>
    %cst_88 = arith.constant dense<0.000000e+00> : vector<16x384xf32>
    %90 = tpu.matmul %89, %87, %cst_88 {dimension_numbers = #tpu.dot_dimension_numbers<[1], [0], [0], [1], [0, 0, 1, 1], [], []>} : vector<16x4xf32>, vector<4x384xf32>, vector<16x384xf32> -> vector<16x384xf32>
    %91 = arith.addf %85, %90 : vector<16x384xf32>
    %c0_89 = arith.constant 0 : index
    %c0_90 = arith.constant 0 : index
    %c36 = arith.constant 36 : index
    %92 = vector.load %arg1[%c0_89, %c0_90, %c36] : memref<1x4x512xf32, #tpu.memory_space<vmem>>, vector<1x4x384xf32>
    %93 = vector.shape_cast %92 : vector<1x4x384xf32> to vector<4x384xf32>
    %c2_91 = arith.constant 2 : index
    %c2_92 = arith.constant 2 : index
    %c0_93 = arith.constant 0 : index
    %c0_94 = arith.constant 0 : index
    %94 = vector.load %arg2[%c2_91, %c2_92, %c0_93, %c0_94] : memref<4x4x16x4xf32, #tpu.memory_space<vmem>>, vector<1x1x16x4xf32>
    %95 = vector.shape_cast %94 : vector<1x1x16x4xf32> to vector<16x4xf32>
    %cst_95 = arith.constant dense<0.000000e+00> : vector<16x384xf32>
    %96 = tpu.matmul %95, %93, %cst_95 {dimension_numbers = #tpu.dot_dimension_numbers<[1], [0], [0], [1], [0, 0, 1, 1], [], []>} : vector<16x4xf32>, vector<4x384xf32>, vector<16x384xf32> -> vector<16x384xf32>
    %97 = arith.addf %91, %96 : vector<16x384xf32>
    %c0_96 = arith.constant 0 : index
    %c0_97 = arith.constant 0 : index
    %c37 = arith.constant 37 : index
    %98 = vector.load %arg1[%c0_96, %c0_97, %c37] : memref<1x4x512xf32, #tpu.memory_space<vmem>>, vector<1x4x384xf32>
    %99 = vector.shape_cast %98 : vector<1x4x384xf32> to vector<4x384xf32>
    %c2_98 = arith.constant 2 : index
    %c3_99 = arith.constant 3 : index
    %c0_100 = arith.constant 0 : index
    %c0_101 = arith.constant 0 : index
    %100 = vector.load %arg2[%c2_98, %c3_99, %c0_100, %c0_101] : memref<4x4x16x4xf32, #tpu.memory_space<vmem>>, vector<1x1x16x4xf32>
    %101 = vector.shape_cast %100 : vector<1x1x16x4xf32> to vector<16x4xf32>
    %cst_102 = arith.constant dense<0.000000e+00> : vector<16x384xf32>
    %102 = tpu.matmul %101, %99, %cst_102 {dimension_numbers = #tpu.dot_dimension_numbers<[1], [0], [0], [1], [0, 0, 1, 1], [], []>} : vector<16x4xf32>, vector<4x384xf32>, vector<16x384xf32> -> vector<16x384xf32>
    %103 = arith.addf %97, %102 : vector<16x384xf32>
    %104 = vector.broadcast %0 : vector<16x1xf32> to vector<16x384xf32>
    %105 = arith.addf %103, %104 : vector<16x384xf32>
    %106 = vector.extract_strided_slice %105 {offsets = [0, 0], sizes = [8, 384], strides = [1, 1]} : vector<16x384xf32> to vector<8x384xf32>
    %107 = vector.extract_strided_slice %105 {offsets = [8, 0], sizes = [8, 384], strides = [1, 1]} : vector<16x384xf32> to vector<8x384xf32>
    %cst_103 = arith.constant 0.000000e+00 : f32
    %108 = vector.broadcast %cst_103 : f32 to vector<8x384xf32>
    %109 = arith.subf %108, %107 : vector<8x384xf32>
    %110 = math.exp %109 : vector<8x384xf32>
    %cst_104 = arith.constant 1.000000e+00 : f32
    %111 = vector.broadcast %cst_104 : f32 to vector<8x384xf32>
    %112 = arith.addf %111, %110 : vector<8x384xf32>
    %113 = tpu.reciprocal %112 : vector<8x384xf32> -> vector<8x384xf32>
    %114 = arith.mulf %106, %113 : vector<8x384xf32>
    %c0_105 = arith.constant 0 : index
    %c2_106 = arith.constant 2 : index
    %c0_107 = arith.constant 0 : index
    %c0_108 = arith.constant 0 : index
    %115 = vector.load %arg4[%c0_105, %c2_106, %c0_107, %c0_108] : memref<1x4x8x384xf32, #tpu.memory_space<vmem>>, vector<1x1x8x384xf32>
    %116 = vector.shape_cast %115 : vector<1x1x8x384xf32> to vector<8x384xf32>
    %117 = vector.shape_cast %114 : vector<8x384xf32> to vector<1x1x8x384xf32>
    tpu.vector_store %arg4[%c0_105, %c2_106, %c0_107, %c0_108], %117 {strides = array<i32>} : memref<1x4x8x384xf32, #tpu.memory_space<vmem>>, vector<1x1x8x384xf32>,
    %cst_109 = arith.constant 0.000000e+00 : f32
    %118 = vector.broadcast %cst_109 : f32 to vector<16x384xf32>
    %c0_110 = arith.constant 0 : index
    %c0_111 = arith.constant 0 : index
    %c19_112 = arith.constant 19 : index
    %119 = vector.load %arg1[%c0_110, %c0_111, %c19_112] : memref<1x4x512xf32, #tpu.memory_space<vmem>>, vector<1x4x384xf32>
    %120 = vector.shape_cast %119 : vector<1x4x384xf32> to vector<4x384xf32>
    %c3_113 = arith.constant 3 : index
    %c0_114 = arith.constant 0 : index
    %c0_115 = arith.constant 0 : index
    %c0_116 = arith.constant 0 : index
    %121 = vector.load %arg2[%c3_113, %c0_114, %c0_115, %c0_116] : memref<4x4x16x4xf32, #tpu.memory_space<vmem>>, vector<1x1x16x4xf32>
    %122 = vector.shape_cast %121 : vector<1x1x16x4xf32> to vector<16x4xf32>
    %cst_117 = arith.constant dense<0.000000e+00> : vector<16x384xf32>
    %123 = tpu.matmul %122, %120, %cst_117 {dimension_numbers = #tpu.dot_dimension_numbers<[1], [0], [0], [1], [0, 0, 1, 1], [], []>} : vector<16x4xf32>, vector<4x384xf32>, vector<16x384xf32> -> vector<16x384xf32>
    %124 = arith.addf %118, %123 : vector<16x384xf32>
    %c0_118 = arith.constant 0 : index
    %c0_119 = arith.constant 0 : index
    %c20_120 = arith.constant 20 : index
    %125 = vector.load %arg1[%c0_118, %c0_119, %c20_120] : memref<1x4x512xf32, #tpu.memory_space<vmem>>, vector<1x4x384xf32>
    %126 = vector.shape_cast %125 : vector<1x4x384xf32> to vector<4x384xf32>
    %c3_121 = arith.constant 3 : index
    %c1_122 = arith.constant 1 : index
    %c0_123 = arith.constant 0 : index
    %c0_124 = arith.constant 0 : index
    %127 = vector.load %arg2[%c3_121, %c1_122, %c0_123, %c0_124] : memref<4x4x16x4xf32, #tpu.memory_space<vmem>>, vector<1x1x16x4xf32>
    %128 = vector.shape_cast %127 : vector<1x1x16x4xf32> to vector<16x4xf32>
    %cst_125 = arith.constant dense<0.000000e+00> : vector<16x384xf32>
    %129 = tpu.matmul %128, %126, %cst_125 {dimension_numbers = #tpu.dot_dimension_numbers<[1], [0], [0], [1], [0, 0, 1, 1], [], []>} : vector<16x4xf32>, vector<4x384xf32>, vector<16x384xf32> -> vector<16x384xf32>
    %130 = arith.addf %124, %129 : vector<16x384xf32>
    %c0_126 = arith.constant 0 : index
    %c0_127 = arith.constant 0 : index
    %c37_128 = arith.constant 37 : index
    %131 = vector.load %arg1[%c0_126, %c0_127, %c37_128] : memref<1x4x512xf32, #tpu.memory_space<vmem>>, vector<1x4x384xf32>
    %132 = vector.shape_cast %131 : vector<1x4x384xf32> to vector<4x384xf32>
    %c3_129 = arith.constant 3 : index
    %c2_130 = arith.constant 2 : index
    %c0_131 = arith.constant 0 : index
    %c0_132 = arith.constant 0 : index
    %133 = vector.load %arg2[%c3_129, %c2_130, %c0_131, %c0_132] : memref<4x4x16x4xf32, #tpu.memory_space<vmem>>, vector<1x1x16x4xf32>
    %134 = vector.shape_cast %133 : vector<1x1x16x4xf32> to vector<16x4xf32>
    %cst_133 = arith.constant dense<0.000000e+00> : vector<16x384xf32>
    %135 = tpu.matmul %134, %132, %cst_133 {dimension_numbers = #tpu.dot_dimension_numbers<[1], [0], [0], [1], [0, 0, 1, 1], [], []>} : vector<16x4xf32>, vector<4x384xf32>, vector<16x384xf32> -> vector<16x384xf32>
    %136 = arith.addf %130, %135 : vector<16x384xf32>
    %c0_134 = arith.constant 0 : index
    %c0_135 = arith.constant 0 : index
    %c38 = arith.constant 38 : index
    %137 = vector.load %arg1[%c0_134, %c0_135, %c38] : memref<1x4x512xf32, #tpu.memory_space<vmem>>, vector<1x4x384xf32>
    %138 = vector.shape_cast %137 : vector<1x4x384xf32> to vector<4x384xf32>
    %c3_136 = arith.constant 3 : index
    %c3_137 = arith.constant 3 : index
    %c0_138 = arith.constant 0 : index
    %c0_139 = arith.constant 0 : index
    %139 = vector.load %arg2[%c3_136, %c3_137, %c0_138, %c0_139] : memref<4x4x16x4xf32, #tpu.memory_space<vmem>>, vector<1x1x16x4xf32>
    %140 = vector.shape_cast %139 : vector<1x1x16x4xf32> to vector<16x4xf32>
    %cst_140 = arith.constant dense<0.000000e+00> : vector<16x384xf32>
    %141 = tpu.matmul %140, %138, %cst_140 {dimension_numbers = #tpu.dot_dimension_numbers<[1], [0], [0], [1], [0, 0, 1, 1], [], []>} : vector<16x4xf32>, vector<4x384xf32>, vector<16x384xf32> -> vector<16x384xf32>
    %142 = arith.addf %136, %141 : vector<16x384xf32>
    %143 = vector.broadcast %0 : vector<16x1xf32> to vector<16x384xf32>
    %144 = arith.addf %142, %143 : vector<16x384xf32>
    %145 = vector.extract_strided_slice %144 {offsets = [0, 0], sizes = [8, 384], strides = [1, 1]} : vector<16x384xf32> to vector<8x384xf32>
    %146 = vector.extract_strided_slice %144 {offsets = [8, 0], sizes = [8, 384], strides = [1, 1]} : vector<16x384xf32> to vector<8x384xf32>
    %cst_141 = arith.constant 0.000000e+00 : f32
    %147 = vector.broadcast %cst_141 : f32 to vector<8x384xf32>
    %148 = arith.subf %147, %146 : vector<8x384xf32>
    %149 = math.exp %148 : vector<8x384xf32>
    %cst_142 = arith.constant 1.000000e+00 : f32
    %150 = vector.broadcast %cst_142 : f32 to vector<8x384xf32>
    %151 = arith.addf %150, %149 : vector<8x384xf32>
    %152 = tpu.reciprocal %151 : vector<8x384xf32> -> vector<8x384xf32>
    %153 = arith.mulf %145, %152 : vector<8x384xf32>
    %c0_143 = arith.constant 0 : index
    %c3_144 = arith.constant 3 : index
    %c0_145 = arith.constant 0 : index
    %c0_146 = arith.constant 0 : index
    %154 = vector.load %arg4[%c0_143, %c3_144, %c0_145, %c0_146] : memref<1x4x8x384xf32, #tpu.memory_space<vmem>>, vector<1x1x8x384xf32>
    %155 = vector.shape_cast %154 : vector<1x1x8x384xf32> to vector<8x384xf32>
    %156 = vector.shape_cast %153 : vector<8x384xf32> to vector<1x1x8x384xf32>
    tpu.vector_store %arg4[%c0_143, %c3_144, %c0_145, %c0_146], %156 {strides = array<i32>} : memref<1x4x8x384xf32, #tpu.memory_space<vmem>>, vector<1x1x8x384xf32>,
    return
  }
  func.func @transform_0(%arg0: i32) -> (i32, i32, i32) {
    %c0_i32 = arith.constant 0 : i32
    %c0_i32_0 = arith.constant 0 : i32
    %c0_i32_1 = arith.constant 0 : i32
    return %arg0, %c0_i32, %c0_i32_0 : i32, i32, i32
  }
  func.func @transform_1(%arg0: i32) -> (i32, i32, i32, i32) {
    %c0_i32 = arith.constant 0 : i32
    %c0_i32_0 = arith.constant 0 : i32
    %c0_i32_1 = arith.constant 0 : i32
    %c0_i32_2 = arith.constant 0 : i32
    %c0_i32_3 = arith.constant 0 : i32
    return %c0_i32, %c0_i32_0, %c0_i32_1, %c0_i32_2 : i32, i32, i32, i32
  }
  func.func @transform_2(%arg0: i32) -> (i32, i32) {
    %c0_i32 = arith.constant 0 : i32
    %c0_i32_0 = arith.constant 0 : i32
    %c0_i32_1 = arith.constant 0 : i32
    return %c0_i32, %c0_i32_0 : i32, i32
  }
  func.func @transform_3(%arg0: i32) -> (i32, i32, i32, i32) {
    %c0_i32 = arith.constant 0 : i32
    %c0_i32_0 = arith.constant 0 : i32
    %c0_i32_1 = arith.constant 0 : i32
    %c0_i32_2 = arith.constant 0 : i32
    return %arg0, %c0_i32, %c0_i32_0, %c0_i32_1 : i32, i32, i32, i32
  }
}

</mosaic_0001>

<bundles_post_ra>
// kernel: tpu_custom_call.1
= control target key start
LH: loop header
LB: loop body
LE: loop exit
PB: predicated region body
PF: predicated region fallthrough
CT: control target
= control target key end

     0   :  { %8 = vsyncpa [#allocation3], 0  ;;  %s3362_s0 = inlined_call_operand.vmem [shape: f32[2,4,512], index: 0, kind: input, shape index: {}]   ;;  %s3363_s1 = inlined_call_operand.vmem [shape: f32[4,4,16,4], index: 1, kind: input, shape index: {}]   ;;  %s3364_s2 = inlined_call_operand.vmem [shape: f32[16,1], index: 2, kind: input, shape index: {}]   ;;  %s3365_s3 = inlined_call_operand.hbm [shape: f32[2,4,8,384], index: 3, kind: output, shape index: {}]  }
   0x1   :  { %10 = vsyncpa [#allocation3 + $0x1], 0  ;;  %s2645_s12 = smov 0   ;;  %s2647_s13 = smov 0  }
   0x2   :  { %s2649_s14 = smov 0   ;;  %s2651_s15 = smov 0  }
   0x3 LB: > { %s2666_s16 = sadd.s32 4294967295, %s2612_s15   ;;  %s2255_s17 = sadd.s32 4294967294, %s2612_s15   ;;  %s2612_s15 = sphi %s2651_s15, %s3371_s15   ;;  %s2608_s14 = sphi %s2649_s14, %s3370_s14   ;;  %s2604_s13 = sphi %s2647_s13, %s3369_s13   ;;  %s2600_s12 = sphi %s2645_s12, %s3368_s12  }
   0x4   : > { %s2670_s18 = sadd.s32 1, %s2612_s15   ;;  %s91_s19 = sadd.s32 1, %s2608_s14 }
   0x5   : > { %s88_s20 = ssub.s32 %s2612_s15, %s2670_s18  ;;  %p101_p0 = scmp.ne.s32.totalorder %s2608_s14, %s2604_s13 }
   0x6   : > { %p89_p1 = scmp.eq.s32.totalorder %s88_s20, 0  ;;  %p102_p2 = scmp.eq.s32.totalorder %s2666_s16, 1 }
   0x7   : > { %p107_p3 = scmp.ne.s32.totalorder %s2604_s13, %s2600_s12  ;;  %p108_p4 = scmp.eq.s32.totalorder %s2255_s17, 1 }
   0x8   : > { %s2681_s21 = scalar_select %p89_p1, %s2608_s14, %s91_s19  }
   0x9   : > { %p2683_p5 = por %p102_p2, %p101_p0  ;;  %p2687_p6 = por %p108_p4, %p107_p3 }
   0xa   : > { %p2258_p7 = scmp.ge.s32.totalorder %s2612_s15, 1  ;;  %p140_p8 = scmp.lt.s32.totalorder %s2612_s15, 3 }
   0xc   : > { %p141_p9 = pnand %p2258_p7, %p140_p8 }
   0xd   : > { %p164_p10 = scmp.lt.s32.totalorder (!%p141_p9), %s2666_s16, 1  ;;  %s2614_s29 = smov (!%p141_p9), 127  }
   0xe   : > { %144 = sbr.rel (%p141_p9) target bundleno = 516 (0x204), region = 32  ;;  %s2615_s30 = smov (!%p141_p9), 110  }
   0xf   : > { %s2616_s4 = smov (!%p141_p9), 109   ;;  %s2617_s5 = smov (!%p141_p9), 126  }
  0x10   : > { %s2618_s6 = smov (!%p141_p9), 108   ;;  %s2619_s9 = smov (!%p141_p9), 92  }
  0x11   : > { %s2620_s17 = smov (!%p141_p9), 91   ;;  %s161_s7 = sand.u32 (!%p141_p9), 1, %s2604_s13  }
  0x12   : > { %s3178_s8 = smul.u32 (!%p141_p9), 96, %s161_s7  ;;  %s2178_s20 = scalar_lea.sflag (!%p141_p9), [#allocation3], %s161_s7 }
  0x13   : > { %s165_s24 = scalar_select %p164_p10, %s2666_s16, 1  ;;  %vm208_vm0 = vcmask 1043456   ;;  %v2768_v50 = vld [vmem:[%s3363_s1] sm:$0xff]  ;;  %vm201_vm1 = vcmask 31744   ;;  %v2781_v53 = vld [vmem:[%s3363_s1 + $0x8] sm:$0xff]  ;;  %vm197_vm2 = vcmask 1039360  }
  0x14   : > { %vm395_vm3 = vcmask 900096   ;;  %vm508_vm4 = vcmask 891904   ;;  %vm700_vm5 = vcmask 1031168   ;;  %vm1018_vm6 = vcmask 883712  }
  0x15   : > { %s2447_s25 = sshll.u32 %s165_s24, 4  ;;  %vm1406_vm7 = vcmask 752640   ;;  %vm1519_vm8 = vcmask 744448   ;;  %vm2019_vm9 = vcmask 736256  }
  0x16   : > { %s168_s28 = scalar_lea.vmem %s3362_s0, %s2447_s25 }
  0x17   : > { %v2698_v0 = vld [vmem:[%s168_s28 + $0x8] sm:$0xff]  ;;  %v2700_v1 = vld [vmem:[%s168_s28] sm:$0xff] }
  0x18   : > { %184 = vst [vmem:[#allocation1 + $0x10] ss:$2 sm:$0xff] %v2698_v0  ;;  %v172_v2 = vld [vmem:[%s168_s28 + $0x8] sm:$0xf]  ;;  %s2570_s28 = scalar_lea.hbm %s3365_s3, 192 }
  0x19   : > { %182 = vst [vmem:[#allocation1] ss:$2 sm:$0xff] %v2700_v1 }
  0x1f   : > { %v187_v3 = vld.sshfl [vmem:[#allocation1 + $0x10] sm:$0xff pattern:$0x75316420]  ;;  %v188_v4 = vld.sshfl [vmem:[#allocation1 + $0x18] sm:$0xff pattern:$0x75316420] }
  0x20   : > { %193 = vrot.lane.b32.xlu0 %v187_v3, %s2614_s29  ;;  %v185_v5 = vld.sshfl [vmem:[#allocation1] sm:$0xff pattern:$0x75316420]  ;;  %v186_v6 = vld.sshfl [vmem:[#allocation1 + $0x8] sm:$0xff pattern:$0x75316420] }
  0x21   : > { %189 = vrot.lane.b32.xlu1 %v185_v5, %s2614_s29  ;;  %288 = vst [vmem:[#allocation1 + $0x10] ss:$2 sm:$0xff] %v172_v2 }
  0x22   : > { %286 = vst [vmem:[#allocation1] ss:$2 sm:$0xff] %v2700_v1 }
  0x28   : > { %195 = vrot.lane.b32.xlu0 %v188_v4, %s2614_s29  ;;  %v2708_v7 = vld.sshfl [vmem:[#allocation1 + $0x10] sm:$0xff pattern:$0x75316420] }
  0x29   : > { %191 = vrot.lane.b32.xlu1 %v186_v6, %s2614_s29  ;;  %382 = vst [vmem:[#allocation1 + $0x10] ss:$2 sm:$0xff] %v2698_v0  ;;  %v2712_v8 = vld.sshfl [vmem:[#allocation1] sm:$0xff pattern:$0x75316420] }
  0x2a   : > { %v2714_v9 = vld.sshfl [vmem:[#allocation1 + $0x8] sm:$0xff pattern:$0x75316420]  ;;  %2272 = vmatpush.msk.msra.mxu3 %vm208_vm0, %v2712_v8  ;;  %v2261_v8 = vld [vmem:[%s3363_s1 + $0x10] sm:$0xff] }
  0x2b   : > { %380 = vst [vmem:[#allocation1] ss:$2 sm:$0xff] %v2700_v1  ;;  %2273 = vmatmul.msk.f32.vlgmr.msra.gmra.mxu3 %vm201_vm1, %v2768_v50 }
  0x30   : > { %v385_v10 = vld.sshfl [vmem:[#allocation1 + $0x10] sm:$0xff pattern:$0x75316420]  ;;  %v386_v11 = vld.sshfl [vmem:[#allocation1 + $0x18] sm:$0xff pattern:$0x75316420] }
  0x31   : > { %391 = vrot.lane.b32.xlu0 %v385_v10, %s2615_s30  ;;  %495 = vst [vmem:[#allocation1 + $0x10] ss:$2 sm:$0xff] %v2698_v0 }
  0x32   : > { %v383_v12 = vld.sshfl [vmem:[#allocation1] sm:$0xff pattern:$0x75316420]  ;;  %v384_v13 = vld.sshfl [vmem:[#allocation1 + $0x8] sm:$0xff pattern:$0x75316420] }
  0x33   : > { %387 = vrot.lane.b32.xlu2 %v383_v12, %s2615_s30  ;;  %493 = vst [vmem:[#allocation1] ss:$2 sm:$0xff] %v2700_v1  ;;  %2274 = vmatmul.msk.f32.gmra.mxu3 %vm201_vm1, %v2781_v53 }
  0x38   : > { %v499_v14 = vld.sshfl [vmem:[#allocation1 + $0x18] sm:$0xff pattern:$0x75316420]  ;;  %v498_v15 = vld.sshfl [vmem:[#allocation1 + $0x10] sm:$0xff pattern:$0x75316420] }
  0x39   : > { %506 = vrot.lane.b32.xlu0 %v499_v14, %s2616_s4  ;;  %687 = vst [vmem:[#allocation1 + $0x10] ss:$2 sm:$0xff] %v2698_v0 }
  0x3a   : > { %v497_v16 = vld.sshfl [vmem:[#allocation1 + $0x8] sm:$0xff pattern:$0x75316420]  ;;  %v496_v17 = vld.sshfl [vmem:[#allocation1] sm:$0xff pattern:$0x75316420] }
  0x3b   : > { %502 = vrot.lane.b32.xlu1 %v497_v16, %s2616_s4  ;;  %685 = vst [vmem:[#allocation1] ss:$2 sm:$0xff] %v2700_v1  ;;  %389 = vrot.lane.b32.xlu2 %v384_v13, %s2615_s30  ;;  %v2262_v16 = vld [vmem:[%s3363_s1 + $0x18] sm:$0xff] }
  0x40   : > { %v690_v18 = vld.sshfl [vmem:[#allocation1 + $0x10] sm:$0xff pattern:$0x75316420]  ;;  %v691_v19 = vld.sshfl [vmem:[#allocation1 + $0x18] sm:$0xff pattern:$0x75316420] }
  0x41   : > { %696 = vrot.lane.b32.xlu0 %v690_v18, %s2617_s5  ;;  %787 = vst [vmem:[#allocation1 + $0x10] ss:$2 sm:$0xff] %v2698_v0 }
  0x42   : > { %v688_v20 = vld.sshfl [vmem:[#allocation1] sm:$0xff pattern:$0x75316420]  ;;  %v689_v21 = vld.sshfl [vmem:[#allocation1 + $0x8] sm:$0xff pattern:$0x75316420] }
  0x43   : > { %393 = vrot.lane.b32.xlu1 %v386_v11, %s2615_s30  ;;  %504 = vrot.lane.b32.xlu2 %v498_v15, %s2616_s4  ;;  %785 = vst [vmem:[#allocation1] ss:$2 sm:$0xff] %v2700_v1 }
  0x48   : > { %v790_v22 = vld.sshfl [vmem:[#allocation1 + $0x10] sm:$0xff pattern:$0x75316420]  ;;  %v791_v23 = vld.sshfl [vmem:[#allocation1 + $0x18] sm:$0xff pattern:$0x75316420] }
  0x49   : > { %893 = vst [vmem:[#allocation1 + $0x10] ss:$2 sm:$0xff] %v2698_v0 }
  0x4a   : > { %v789_v24 = vld.sshfl [vmem:[#allocation1 + $0x8] sm:$0xff pattern:$0x75316420]  ;;  %v788_v25 = vld.sshfl [vmem:[#allocation1] sm:$0xff pattern:$0x75316420] }
  0x4b   : > { %698 = vrot.lane.b32.xlu1 %v691_v19, %s2617_s5  ;;  %794 = vrot.lane.b32.xlu0 %v789_v24, %s2614_s29  ;;  %891 = vst [vmem:[#allocation1] ss:$2 sm:$0xff] %v2700_v1 }
  0x4c   : > { %500 = vrot.lane.b32.xlu2 %v496_v17, %s2616_s4  ;;  %v2621_v17 = vmov 0  }
  0x4d   : > { %2501 = vset.pattern.permute.xlu1 %v2621_v17  ;;  %2500 = vset.pattern.permute.xlu0 %v2621_v17 }
  0x50   : > { %v896_v26 = vld.sshfl [vmem:[#allocation1 + $0x10] sm:$0xff pattern:$0x75316420]  ;;  %v897_v27 = vld.sshfl [vmem:[#allocation1 + $0x18] sm:$0xff pattern:$0x75316420] }
  0x51   : > { %1005 = vst [vmem:[#allocation1 + $0x10] ss:$2 sm:$0xff] %v2698_v0 }
  0x52   : > { %v894_v28 = vld.sshfl [vmem:[#allocation1] sm:$0xff pattern:$0x75316420]  ;;  %v895_v29 = vld.sshfl [vmem:[#allocation1 + $0x8] sm:$0xff pattern:$0x75316420] }
  0x53   : > { %692 = vrot.lane.b32.xlu1 %v688_v20, %s2617_s5  ;;  %898 = vrot.lane.b32.xlu0 %v894_v28, %s2616_s4  ;;  %1003 = vst [vmem:[#allocation1] ss:$2 sm:$0xff] %v2700_v1 }
  0x54   : > { %792 = vrot.lane.b32.xlu2 %v788_v25, %s2614_s29 }
  0x58   : > { %v1008_v30 = vld.sshfl [vmem:[#allocation1 + $0x10] sm:$0xff pattern:$0x75316420]  ;;  %v1009_v31 = vld.sshfl [vmem:[#allocation1 + $0x18] sm:$0xff pattern:$0x75316420] }
  0x59   : > { %1188 = vst [vmem:[#allocation1 + $0x10] ss:$2 sm:$0xff] %v2698_v0 }
  0x5a   : > { %v1006_v32 = vld.sshfl [vmem:[#allocation1] sm:$0xff pattern:$0x75316420]  ;;  %v1007_v33 = vld.sshfl [vmem:[#allocation1 + $0x8] sm:$0xff pattern:$0x75316420] }
  0x5b   : > { %900 = vrot.lane.b32.xlu1 %v895_v29, %s2616_s4  ;;  %796 = vrot.lane.b32.xlu0 %v790_v22, %s2614_s29  ;;  %1186 = vst [vmem:[#allocation1] ss:$2 sm:$0xff] %v2700_v1 }
  0x5c   : > { %694 = vrot.lane.b32.xlu2 %v689_v21, %s2617_s5  ;;  %v2282_v21 = vld [vmem:[%s3363_s1 + $0x28] sm:$0xff] }
  0x60   : > { %v1191_v34 = vld.sshfl [vmem:[#allocation1 + $0x10] sm:$0xff pattern:$0x75316420]  ;;  %v1192_v35 = vld.sshfl [vmem:[#allocation1 + $0x18] sm:$0xff pattern:$0x75316420] }
  0x61   : > { %1287 = vst [vmem:[#allocation1 + $0x10] ss:$2 sm:$0xff] %v2698_v0 }
  0x62   : > { %v1189_v36 = vld.sshfl [vmem:[#allocation1] sm:$0xff pattern:$0x75316420]  ;;  %v1190_v37 = vld.sshfl [vmem:[#allocation1 + $0x8] sm:$0xff pattern:$0x75316420] }
  0x63   : > { %798 = vrot.lane.b32.xlu1 %v791_v23, %s2614_s29  ;;  %1014 = vrot.lane.b32.xlu0 %v1008_v30, %s2618_s6  ;;  %1285 = vst [vmem:[#allocation1] ss:$2 sm:$0xff] %v2700_v1 }
  0x64   : > { %902 = vrot.lane.b32.xlu2 %v896_v26, %s2616_s4 }
  0x68   : > { %v1290_v38 = vld.sshfl [vmem:[#allocation1 + $0x10] sm:$0xff pattern:$0x75316420]  ;;  %v1291_v39 = vld.sshfl [vmem:[#allocation1 + $0x18] sm:$0xff pattern:$0x75316420] }
  0x69   : > { %1393 = vst [vmem:[#allocation1 + $0x10] ss:$2 sm:$0xff] %v2698_v0 }
  0x6a   : > { %v1288_v40 = vld.sshfl [vmem:[#allocation1] sm:$0xff pattern:$0x75316420]  ;;  %v1289_v41 = vld.sshfl [vmem:[#allocation1 + $0x8] sm:$0xff pattern:$0x75316420] }
  0x6b   : > { %1016 = vrot.lane.b32.xlu1 %v1009_v31, %s2618_s6  ;;  %1010 = vrot.lane.b32.xlu0 %v1006_v32, %s2618_s6  ;;  %1391 = vst [vmem:[#allocation1] ss:$2 sm:$0xff] %v2700_v1 }
  0x6c   : > { %1012 = vrot.lane.b32.xlu2 %v1007_v33, %s2618_s6 }
  0x70   : > { %v1396_v42 = vld.sshfl [vmem:[#allocation1 + $0x10] sm:$0xff pattern:$0x75316420]  ;;  %v1397_v43 = vld.sshfl [vmem:[#allocation1 + $0x18] sm:$0xff pattern:$0x75316420] }
  0x71   : > { %1506 = vst [vmem:[#allocation1 + $0x10] ss:$2 sm:$0xff] %v2698_v0 }
  0x72   : > { %v1394_v44 = vld.sshfl [vmem:[#allocation1] sm:$0xff pattern:$0x75316420]  ;;  %v1395_v45 = vld.sshfl [vmem:[#allocation1 + $0x8] sm:$0xff pattern:$0x75316420] }
  0x73   : > { %1197 = vrot.lane.b32.xlu1 %v1191_v34, %s2616_s4  ;;  %1292 = vrot.lane.b32.xlu0 %v1288_v40, %s2615_s30  ;;  %1504 = vst [vmem:[#allocation1] ss:$2 sm:$0xff] %v2700_v1 }
  0x74   : > { %904 = vrot.lane.b32.xlu2 %v897_v27, %s2616_s4  ;;  %v2292_v27 = vld [vmem:[%s3363_s1 + $0x30] sm:$0xff] }
  0x78   : > { %v1509_v46 = vld.sshfl [vmem:[#allocation1 + $0x10] sm:$0xff pattern:$0x75316420]  ;;  %v1510_v47 = vld.sshfl [vmem:[#allocation1 + $0x18] sm:$0xff pattern:$0x75316420] }
  0x79   : > { %1689 = vst [vmem:[#allocation1 + $0x10] ss:$2 sm:$0xff] %v2698_v0 }
  0x7a   : > { %v1508_v48 = vld.sshfl [vmem:[#allocation1 + $0x8] sm:$0xff pattern:$0x75316420]  ;;  %v1507_v49 = vld.sshfl [vmem:[#allocation1] sm:$0xff pattern:$0x75316420] }
  0x7b   : > { %1294 = vrot.lane.b32.xlu1 %v1289_v41, %s2615_s30  ;;  %1195 = vrot.lane.b32.xlu0 %v1190_v37, %s2616_s4  ;;  %1687 = vst [vmem:[#allocation1] ss:$2 sm:$0xff] %v2700_v1 }
  0x7c   : > { %1199 = vrot.lane.b32.xlu2 %v1192_v35, %s2616_s4  ;;  %v2293_v35 = vld [vmem:[%s3363_s1 + $0x38] sm:$0xff] }
  0x80   : > { %v1693_v54 = vld.sshfl [vmem:[#allocation1 + $0x18] sm:$0xff pattern:$0x75316420]  ;;  %v1692_v55 = vld.sshfl [vmem:[#allocation1 + $0x10] sm:$0xff pattern:$0x75316420] }
  0x81   : > { %1788 = vst [vmem:[#allocation1 + $0x10] ss:$2 sm:$0xff] %v2698_v0 }
  0x82   : > { %v1690_v51 = vld.sshfl [vmem:[#allocation1] sm:$0xff pattern:$0x75316420]  ;;  %v2775_v52 = vld.sshfl [vmem:[#allocation1 + $0x8] sm:$0xff pattern:$0x75316420] }
  0x83   : > { %1402 = vrot.lane.b32.xlu0 %v1396_v42, %s2619_s9  ;;  %1398 = vrot.lane.b32.xlu1 %v1394_v44, %s2619_s9  ;;  %1786 = vst [vmem:[#allocation1] ss:$2 sm:$0xff] %v2700_v1 }
  0x84   : > { %1193 = vrot.lane.b32.xlu2 %v1189_v36, %s2616_s4 }
  0x88   : > { %v2789_v57 = vld.sshfl [vmem:[#allocation1 + $0x10] sm:$0xff pattern:$0x75316420]  ;;  %v2791_v58 = vld.sshfl [vmem:[#allocation1 + $0x18] sm:$0xff pattern:$0x75316420] }
  0x89   : > { %1894 = vst [vmem:[#allocation1 + $0x10] ss:$2 sm:$0xff] %v2698_v0 }
  0x8a   : > { %v1789_v56 = vld.sshfl [vmem:[#allocation1] sm:$0xff pattern:$0x75316420]  ;;  %v1790_v60 = vld.sshfl [vmem:[#allocation1 + $0x8] sm:$0xff pattern:$0x75316420] }
  0x8b   : > { %1296 = vrot.lane.b32.xlu1 %v1290_v38, %s2615_s30  ;;  %1513 = vrot.lane.b32.xlu0 %v1508_v48, %s2620_s17  ;;  %1892 = vst [vmem:[#allocation1] ss:$2 sm:$0xff] %v2700_v1  ;;  %v2305_v48 = vld [vmem:[%s3363_s1 + $0x50] sm:$0xff] }
  0x8c   : > { %1400 = vrot.lane.b32.xlu2 %v1395_v45, %s2619_s9 }
  0x8d   : > { %v388_v59 = vpop.permute.xlu2 %387 }
  0x90   : > { %v1897_v13 = vld.sshfl [vmem:[#allocation1 + $0x10] sm:$0xff pattern:$0x75316420]  ;;  %v2821_v14 = vld.sshfl [vmem:[#allocation1 + $0x18] sm:$0xff pattern:$0x75316420] }
  0x91   : > { %2006 = vst [vmem:[#allocation1 + $0x10] ss:$2 sm:$0xff] %v2698_v0 }
  0x92   : > { %v194_v61 = vpop.permute.xlu0 %193  ;;  %v2797_v2 = vld.sshfl [vmem:[#allocation1] sm:$0xff pattern:$0x75316420]  ;;  %v1896_v3 = vld.sshfl [vmem:[#allocation1 + $0x8] sm:$0xff pattern:$0x75316420] }
  0x93   : > { %1515 = vrot.lane.b32.xlu1 %v1509_v46, %s2620_s17  ;;  %1404 = vrot.lane.b32.xlu0 %v1397_v43, %s2619_s9  ;;  %v190_v62 = vpop.permute.xlu1 %189  ;;  %2004 = vst [vmem:[#allocation1] ss:$2 sm:$0xff] %v2700_v1  ;;  %v2303_v43 = vld [vmem:[%s3363_s1 + $0x40] sm:$0xff]  ;;  %s2449_s9 = smul.u32 96, %s2666_s16 }
  0x94   : > { %1298 = vrot.lane.b32.xlu2 %v1291_v39, %s2615_s30  ;;  %v170_v39 = vld [vmem:[%s3364_s2 + $0x8] sm:$0xff]  ;;  %v169_v46 = vld [vmem:[%s3364_s2] sm:$0xff] }
  0x95   : > { %v390_v63 = vpop.permute.xlu2 %389  ;;  %s2189_s11 = scalar_lea.hbm %s3365_s3, %s2449_s9 }
  0x96   : > { %v396_v1 = vsel %vm395_vm3, %v388_v59, %v390_v63  ;;  %s2192_s19 = sshll.u32 %s2189_s11, 4  ;;  %s2193_s19 = int_to_ptr.hbm [resolvable:$true] %s2192_s19 }
  0x97   : > { %s2564_s24 = sshra.s32 %s2193_s19, 4  ;;  %s2565_s24 = int_to_ptr.hbm [resolvable:$true] %s2564_s24 }
  0x98   : > { %v2010_v32 = vld.sshfl [vmem:[#allocation1 + $0x18] sm:$0xff pattern:$0x75316420]  ;;  %v2009_v40 = vld.sshfl [vmem:[#allocation1 + $0x10] sm:$0xff pattern:$0x75316420]  ;;  %p2571_p0 = scmp.lt.s32.totalorder %s2565_s24, %s3365_s3 }
  0x99   : > { %s2566_s25 = scalar_lea.hbm %s2565_s24, 96 }
  0x9a   : > { %v196_v4 = vpop.permute.xlu0 %195  ;;  %v2008_v31 = vld.sshfl [vmem:[#allocation1 + $0x8] sm:$0xff pattern:$0x75316420]  ;;  %p2567_p11 = scmp.ne.s32.totalorder %s2565_s24, %s2566_s25  ;;  %p2572_p1 = scmp.lt.s32.totalorder %s2570_s28, %s2566_s25 }
  0x9b   : > { %1511 = vrot.lane.b32.xlu1 %v1507_v49, %s2620_s17  ;;  %v192_v5 = vpop.permute.xlu1 %191  ;;  %v200_v6 = vsel %vm197_vm2, %v194_v61, %v196_v4  ;;  %1700 = vrot.lane.b32.xlu0 %v1693_v54, %s2618_s6  ;;  %v2326_v4 = vld [vmem:[%s3363_s1 + $0x68] sm:$0xff] }
  0x9c   : > { %v198_v10 = vsel %vm197_vm2, %v190_v62, %v192_v5  ;;  %v199_v11 = vsel %vm197_vm2, %v192_v5, %v194_v61  ;;  %2269 = vmatpush.msk.msra.mxu2 %vm208_vm0, %v200_v6  ;;  %1517 = vrot.lane.b32.xlu2 %v1510_v47, %s2620_s17  ;;  %v2007_v47 = vld.sshfl [vmem:[#allocation1] sm:$0xff pattern:$0x75316420]  ;;  %p2568_p12 = pnand %p2567_p11, %p2683_p5  ;;  %p2573_p2 = por %p2572_p1, %p2571_p0 }
  0x9d   : > { %2263 = vmatpush.msk.msra.mxu0 %vm208_vm0, %v198_v10  ;;  %2266 = vmatpush.msk.msra.mxu1 %vm208_vm0, %v199_v11  ;;  %v505_v12 = vpop.permute.xlu2 %504 }
  0x9e   : > { %2264 = vmatmul.msk.f32.vlgmr.msra.gmra.mxu0 %vm201_vm1, %v2261_v8  ;;  %2267 = vmatmul.msk.f32.vlgmr.msra.gmra.mxu1 %vm201_vm1, %v2261_v8  ;;  %p2569_p13 = pneg %p2568_p12 }
  0x9f   : > { %2270 = vmatmul.msk.f32.vlgmr.msra.gmra.mxu2 %vm201_vm1, %v2261_v8  ;;  %2275 = vmatpush.msk.msrb.mxu0 %vm208_vm0, %v2714_v9 }
  0xa0   : > { %2283 = vmatpush.msk.msrb.mxu2 %vm208_vm0, %v396_v1  ;;  %2278 = vmatpush.msk.msrb.mxu1 %vm208_vm0, %v2708_v7  ;;  %v2281_v7 = vld [vmem:[%s3363_s1 + $0x20] sm:$0xff]  ;;  %v2336_v1 = vld [vmem:[%s3363_s1 + $0x70] sm:$0xff]  ;;  %p2574_p3 = pnand %p2573_p2, %p2569_p13 }
  0xa3   : > { %1793 = vrot.lane.b32.xlu1 %v1789_v56, %s2616_s4  ;;  %v392_v15 = vpop.permute.xlu0 %391  ;;  %1694 = vrot.lane.b32.xlu0 %v1690_v51, %s2618_s6  ;;  %v2304_v51 = vld [vmem:[%s3363_s1 + $0x48] sm:$0xff] }
  0xa4   : > { %v397_v9 = vsel %vm395_vm3, %v390_v63, %v392_v15  ;;  %1698 = vrot.lane.b32.xlu2 %v1692_v55, %s2618_s6 }
  0xa5   : > { %2286 = vmatpush.msk.msrb.mxu3 %vm208_vm0, %v397_v9 }
  0xa6   : > { %2265 = vmatmul.msk.f32.gmra.mxu0 %vm201_vm1, %v2262_v16  ;;  %2268 = vmatmul.msk.f32.gmra.mxu1 %vm201_vm1, %v2262_v16  ;;  %v501_v0 = vpop.permute.xlu2 %500 }
  0xa7   : > { %2271 = vmatmul.msk.f32.gmra.mxu2 %vm201_vm1, %v2262_v16  ;;  %2287 = vmatmul.msk.f32.vlgmr.msrb.gmra.mxu3 %vm201_vm1, %v2281_v7  ;;  %v2337_v16 = vld [vmem:[%s3363_s1 + $0x78] sm:$0xff] }
  0xab   : > { %1696 = vrot.lane.b32.xlu1 %v2775_v52, %s2618_s6  ;;  %v507_v18 = vpop.permute.xlu0 %506  ;;  %1901 = vrot.lane.b32.xlu0 %v1896_v3, %s2620_s17  ;;  %s2622_s6 = smov 90  }
  0xac   : > { %v511_v19 = vsel %vm508_vm4, %v505_v12, %v507_v18  ;;  %1795 = vrot.lane.b32.xlu2 %v1790_v60, %s2616_s4  ;;  %v2325_v60 = vld [vmem:[%s3363_s1 + $0x60] sm:$0xff] }
  0xad   : > { %v503_v20 = vpop.permute.xlu1 %502  ;;  %2300 = vmatpush.msk.msra.mxu3 %vm208_vm0, %v511_v19 }
  0xae   : > { %v510_v22 = vsel %vm508_vm4, %v503_v20, %v505_v12  ;;  %v509_v23 = vsel %vm508_vm4, %v501_v0, %v503_v20  ;;  %2276 = vmatmul.msk.f32.vlgmr.msrb.gmra.mxu0 %vm201_vm1, %v2768_v50  ;;  %2279 = vmatmul.msk.f32.vlgmr.msrb.gmra.mxu1 %vm201_vm1, %v2768_v50  ;;  %v793_v24 = vpop.permute.xlu2 %792  ;;  %v2350_v20 = vld [vmem:[%s3363_s1 + $0x80] sm:$0xff] }
  0xaf   : > { %2284 = vmatmul.msk.f32.vlgmr.msrb.gmra.mxu2 %vm201_vm1, %v2281_v7  ;;  %2294 = vmatpush.msk.msra.mxu1 %vm208_vm0, %v509_v23 }
  0xb0   : > { %2297 = vmatpush.msk.msra.mxu2 %vm208_vm0, %v510_v22  ;;  %2288 = vmatmul.msk.f32.gmra.mxu3 %vm201_vm1, %v2282_v21 }
  0xb3   : > { %1903 = vrot.lane.b32.xlu1 %v1897_v13, %s2620_s17  ;;  %v697_v25 = vpop.permute.xlu0 %696  ;;  %1799 = vrot.lane.b32.xlu0 %v2791_v58, %s2616_s4 }
  0xb4   : > { %1899 = vrot.lane.b32.xlu2 %v2797_v2, %s2620_s17 }
  0xb5   : > { %v394_v26 = vpop.permute.xlu1 %393 }
  0xb6   : > { %v398_v28 = vsel %vm395_vm3, %v392_v15, %v394_v26  ;;  %2277 = vmatmul.msk.f32.gmra.mxu0 %vm201_vm1, %v2781_v53  ;;  %2280 = vmatmul.msk.f32.gmra.mxu1 %vm201_vm1, %v2781_v53  ;;  %v695_v29 = vpop.permute.xlu2 %694 }
  0xb7   : > { %2289 = vmatpush.msk.msra.mxu0 %vm208_vm0, %v398_v28  ;;  %2285 = vmatmul.msk.f32.gmra.mxu2 %vm201_vm1, %v2282_v21  ;;  %v702_v30 = vsel %vm700_vm5, %v695_v29, %v697_v25 }
  0xb8   : > { %2301 = vmatmul.msk.f32.vlgmr.msra.gmra.mxu3 %vm201_vm1, %v2292_v27  ;;  %2310 = vmatpush.msk.msrb.mxu1 %vm208_vm0, %v702_v30 }
  0xbb   : > { %2013 = vrot.lane.b32.xlu1 %v2008_v31, %s2622_s6  ;;  %2017 = vrot.lane.b32.xlu0 %v2010_v32, %s2622_s6  ;;  %v2353_v31 = vld [vmem:[%s3363_s1 + $0x98] sm:$0xff] }
  0xbc   : > { %1797 = vrot.lane.b32.xlu2 %v2789_v57, %s2616_s4  ;;  %v2306_v57 = vld [vmem:[%s3363_s1 + $0x58] sm:$0xff]  ;;  %s3191_s4 = scalar_lea.vmem [#allocation2], %s3178_s8 }
  0xbd   : > { %v699_v33 = vpop.permute.xlu1 %698  ;;  %v795_v34 = vpop.permute.xlu0 %794 }
  0xbe   : > { %v703_v36 = vsel %vm700_vm5, %v697_v25, %v699_v33  ;;  %v800_v37 = vsel %vm197_vm2, %v793_v24, %v795_v34  ;;  %2290 = vmatmul.msk.f32.vlgmr.msra.gmra.mxu0 %vm201_vm1, %v2281_v7  ;;  %2295 = vmatmul.msk.f32.vlgmr.msra.gmra.mxu1 %vm201_vm1, %v2292_v27  ;;  %v903_v38 = vpop.permute.xlu2 %902  ;;  %v2352_v24 = vld [vmem:[%s3363_s1 + $0x90] sm:$0xff] }
  0xbf   : > { %2313 = vmatpush.msk.msrb.mxu2 %vm208_vm0, %v703_v36  ;;  %2316 = vmatpush.msk.msrb.mxu3 %vm208_vm0, %v800_v37 }
  0xc0   : > { %2298 = vmatmul.msk.f32.vlgmr.msra.gmra.mxu2 %vm201_vm1, %v2292_v27  ;;  %2302 = vmatmul.msk.f32.gmra.mxu3 %vm201_vm1, %v2293_v35  ;;  %v2351_v27 = vld [vmem:[%s3363_s1 + $0x88] sm:$0xff] }
  0xc3   : > { %1905 = vrot.lane.b32.xlu1 %v2821_v14, %s2620_s17  ;;  %606 = vperm.xlu0 %2500, %v170_v39   ;;  %s2190_s17 = sshll.u32 %s3191_s4, 4  ;;  %s2191_s17 = int_to_ptr.vmem [resolvable:$true] %s2190_s17 }
  0xc4   : > { %2015 = vrot.lane.b32.xlu2 %v2009_v40, %s2622_s6  ;;  %v2373_v40 = vld [vmem:[%s3363_s1 + $0xa8] sm:$0xff] }
  0xc5   : > { %v693_v41 = vpop.permute.xlu1 %692  ;;  %v899_v42 = vpop.permute.xlu0 %898 }
  0xc6   : > { %v701_v44 = vsel %vm700_vm5, %v693_v41, %v695_v29  ;;  %2291 = vmatmul.msk.f32.gmra.mxu0 %vm201_vm1, %v2282_v21  ;;  %2296 = vmatmul.msk.f32.gmra.mxu1 %vm201_vm1, %v2293_v35  ;;  %v1013_v45 = vpop.permute.xlu2 %1012 }
  0xc7   : > { %2307 = vmatpush.msk.msrb.mxu0 %vm208_vm0, %v701_v44 }
  0xc8   : > { %2299 = vmatmul.msk.f32.gmra.mxu2 %vm201_vm1, %v2293_v35  ;;  %2317 = vmatmul.msk.f32.vlgmr.msrb.gmra.mxu3 %vm201_vm1, %v2303_v43 }
  0xcb   : > { %601 = vperm.xlu1 %2501, %v169_v46   ;;  %v2383_v46 = vld [vmem:[%s3363_s1 + $0xb0] sm:$0xff] }
  0xcc   : > { %2011 = vrot.lane.b32.xlu2 %v2007_v47, %s2622_s6 }
  0xcd   : > { %v901_v49 = vpop.permute.xlu1 %900  ;;  %v797_v50 = vpop.permute.xlu0 %796 }
  0xce   : > { %v906_v52 = vsel %vm508_vm4, %v899_v42, %v901_v49  ;;  %v907_v53 = vsel %vm508_vm4, %v901_v49, %v903_v38  ;;  %v801_v54 = vsel %vm197_vm2, %v795_v34, %v797_v50  ;;  %2308 = vmatmul.msk.f32.vlgmr.msrb.gmra.mxu0 %vm201_vm1, %v2305_v48  ;;  %2311 = vmatmul.msk.f32.vlgmr.msrb.gmra.mxu1 %vm201_vm1, %v2305_v48  ;;  %v905_v55 = vpop.permute.xlu2 %904  ;;  %v2372_v34 = vld [vmem:[%s3363_s1 + $0xa0] sm:$0xff]  ;;  %v321_v49 = vpop.f32.mrf.mxu3 }
  0xcf   : > { %2319 = vmatpush.msk.msra.mxu0 %vm208_vm0, %v801_v54  ;;  %2327 = vmatpush.msk.msra.mxu2 %vm208_vm0, %v906_v52  ;;  %v908_v56 = vsel %vm508_vm4, %v903_v38, %v905_v55  ;;  %v2384_v55 = vld [vmem:[%s3363_s1 + $0xb8] sm:$0xff] }
  0xd0   : > { %2314 = vmatmul.msk.f32.vlgmr.msrb.gmra.mxu2 %vm201_vm1, %v2305_v48  ;;  %2318 = vmatmul.msk.f32.gmra.mxu3 %vm201_vm1, %v2304_v51 }
  0xd1   : > { %2330 = vmatpush.msk.msra.mxu3 %vm208_vm0, %v907_v53  ;;  %2333 = vmatpush.msk.msrb.mxu0 %vm208_vm0, %v908_v56 }
  0xd5   : > { %v799_v58 = vpop.permute.xlu1 %798  ;;  %v1015_v59 = vpop.permute.xlu0 %1014 }
  0xd6   : > { %v802_v61 = vsel %vm197_vm2, %v797_v50, %v799_v58  ;;  %v1020_v62 = vsel %vm1018_vm6, %v1013_v45, %v1015_v59  ;;  %2309 = vmatmul.msk.f32.gmra.mxu0 %vm201_vm1, %v2306_v57  ;;  %2312 = vmatmul.msk.f32.gmra.mxu1 %vm201_vm1, %v2306_v57  ;;  %v1200_v63 = vpop.permute.xlu2 %1199 }
  0xd7   : > { %2322 = vmatpush.msk.msra.mxu1 %vm208_vm0, %v802_v61  ;;  %2341 = vmatpush.msk.msrb.mxu2 %vm208_vm0, %v1020_v62  ;;  %v324_v61 = vpop.f32.mrf.mxu3 }
  0xd8   : > { %2315 = vmatmul.msk.f32.gmra.mxu2 %vm201_vm1, %v2306_v57  ;;  %2331 = vmatmul.msk.f32.vlgmr.msra.gmra.mxu3 %vm201_vm1, %v2325_v60 }
  0xdd   : > { %v1017_v2 = vpop.permute.xlu1 %1016  ;;  %v1011_v3 = vpop.permute.xlu0 %1010 }
  0xde   : > { %v1021_v5 = vsel %vm1018_vm6, %v1015_v59, %v1017_v2  ;;  %v1019_v6 = vsel %vm1018_vm6, %v1011_v3, %v1013_v45  ;;  %2320 = vmatmul.msk.f32.vlgmr.msra.gmra.mxu0 %vm201_vm1, %v2303_v43  ;;  %2323 = vmatmul.msk.f32.vlgmr.msra.gmra.mxu1 %vm201_vm1, %v2303_v43  ;;  %v1194_v8 = vpop.permute.xlu2 %1193 }
  0xdf   : > { %2338 = vmatpush.msk.msrb.mxu1 %vm208_vm0, %v1019_v6  ;;  %2344 = vmatpush.msk.msrb.mxu3 %vm208_vm0, %v1021_v5  ;;  %v2397_v5 = vld [vmem:[%s3363_s1 + $0xc0] sm:$0xff] }
  0xe0   : > { %2328 = vmatmul.msk.f32.vlgmr.msra.gmra.mxu2 %vm201_vm1, %v2325_v60  ;;  %2332 = vmatmul.msk.f32.gmra.mxu3 %vm201_vm1, %v2326_v4 }
  0xe5   : > { %v1198_v10 = vpop.permute.xlu1 %1197  ;;  %v1293_v11 = vpop.permute.xlu0 %1292 }
  0xe6   : > { %v1203_v12 = vsel %vm508_vm4, %v1198_v10, %v1200_v63  ;;  %2321 = vmatmul.msk.f32.gmra.mxu0 %vm201_vm1, %v2304_v51  ;;  %2324 = vmatmul.msk.f32.gmra.mxu1 %vm201_vm1, %v2304_v51  ;;  %v1401_v13 = vpop.permute.xlu2 %1400 }
  0xe7   : > { %2360 = vmatpush.msk.msra.mxu2 %vm208_vm0, %v1203_v12 }
  0xe8   : > { %2329 = vmatmul.msk.f32.gmra.mxu2 %vm201_vm1, %v2326_v4  ;;  %2345 = vmatmul.msk.f32.vlgmr.msrb.gmra.mxu3 %vm201_vm1, %v2336_v1 }
  0xed   : > { %v1295_v14 = vpop.permute.xlu1 %1294  ;;  %v1196_v15 = vpop.permute.xlu0 %1195 }
  0xee   : > { %v1300_v9 = vsel %vm395_vm3, %v1293_v11, %v1295_v14  ;;  %v1201_v7 = vsel %vm508_vm4, %v1194_v8, %v1196_v15  ;;  %v1202_v0 = vsel %vm508_vm4, %v1196_v15, %v1198_v10  ;;  %2334 = vmatmul.msk.f32.vlgmr.msrb.gmra.mxu0 %vm201_vm1, %v2325_v60  ;;  %2339 = vmatmul.msk.f32.vlgmr.msrb.gmra.mxu1 %vm201_vm1, %v2336_v1  ;;  %v1299_v17 = vpop.permute.xlu2 %1298 }
  0xef   : > { %2357 = vmatpush.msk.msra.mxu1 %vm208_vm0, %v1202_v0  ;;  %2363 = vmatpush.msk.msra.mxu3 %vm208_vm0, %v1300_v9  ;;  %v2398_v9 = vld [vmem:[%s3363_s1 + $0xc8] sm:$0xff] }
  0xf0   : > { %2342 = vmatmul.msk.f32.vlgmr.msrb.gmra.mxu2 %vm201_vm1, %v2336_v1  ;;  %2346 = vmatmul.msk.f32.gmra.mxu3 %vm201_vm1, %v2337_v16 }
  0xf1   : > { %2354 = vmatpush.msk.msra.mxu0 %vm208_vm0, %v1201_v7 }
  0xf5   : > { %v1403_v18 = vpop.permute.xlu0 %1402  ;;  %v1399_v19 = vpop.permute.xlu1 %1398 }
  0xf6   : > { %v1408_v21 = vsel %vm1406_vm7, %v1401_v13, %v1403_v18  ;;  %v1407_v22 = vsel %vm1406_vm7, %v1399_v19, %v1401_v13  ;;  %2335 = vmatmul.msk.f32.gmra.mxu0 %vm201_vm1, %v2326_v4  ;;  %2340 = vmatmul.msk.f32.gmra.mxu1 %vm201_vm1, %v2337_v16  ;;  %v1518_v23 = vpop.permute.xlu2 %1517 }
  0xf7   : > { %2374 = vmatpush.msk.msrb.mxu2 %vm208_vm0, %v1407_v22  ;;  %2377 = vmatpush.msk.msrb.mxu3 %vm208_vm0, %v1408_v21  ;;  %v2400_v22 = vld [vmem:[%s3363_s1 + $0xd8] sm:$0xff] }
  0xf8   : > { %2343 = vmatmul.msk.f32.gmra.mxu2 %vm201_vm1, %v2337_v16  ;;  %2364 = vmatmul.msk.f32.vlgmr.msra.gmra.mxu3 %vm201_vm1, %v2350_v20 }
  0xfd   : > { %v1297_v25 = vpop.permute.xlu1 %1296  ;;  %v1514_v26 = vpop.permute.xlu0 %1513 }
  0xfe   : > { %v1301_v28 = vsel %vm395_vm3, %v1295_v14, %v1297_v25  ;;  %v1302_v29 = vsel %vm395_vm3, %v1297_v25, %v1299_v17  ;;  %2355 = vmatmul.msk.f32.vlgmr.msra.gmra.mxu0 %vm201_vm1, %v2352_v24  ;;  %2358 = vmatmul.msk.f32.vlgmr.msra.gmra.mxu1 %vm201_vm1, %v2352_v24  ;;  %v1699_v30 = vpop.permute.xlu2 %1698  ;;  %v2399_v14 = vld [vmem:[%s3363_s1 + $0xd0] sm:$0xff]  ;;  %v2419_v25 = vld [vmem:[%s3363_s1 + $0xe0] sm:$0xff] }
  0xff   : > { %2366 = vmatpush.msk.msrb.mxu0 %vm208_vm0, %v1301_v28  ;;  %2369 = vmatpush.msk.msrb.mxu1 %vm208_vm0, %v1302_v29 }
 0x100   : > { %2361 = vmatmul.msk.f32.vlgmr.msra.gmra.mxu2 %vm201_vm1, %v2352_v24  ;;  %2365 = vmatmul.msk.f32.gmra.mxu3 %vm201_vm1, %v2351_v27 }
 0x105   : > { %v1516_v32 = vpop.permute.xlu1 %1515  ;;  %v1405_v33 = vpop.permute.xlu0 %1404 }
 0x106   : > { %v1521_v35 = vsel %vm1519_vm8, %v1514_v26, %v1516_v32  ;;  %v1522_v36 = vsel %vm1519_vm8, %v1516_v32, %v1518_v23  ;;  %v1409_v37 = vsel %vm1406_vm7, %v1403_v18, %v1405_v33  ;;  %2356 = vmatmul.msk.f32.gmra.mxu0 %vm201_vm1, %v2353_v31  ;;  %2359 = vmatmul.msk.f32.gmra.mxu1 %vm201_vm1, %v2353_v31  ;;  %v1796_v38 = vpop.permute.xlu2 %1795 }
 0x107   : > { %2380 = vmatpush.msk.msra.mxu0 %vm208_vm0, %v1409_v37  ;;  %2388 = vmatpush.msk.msra.mxu2 %vm208_vm0, %v1521_v35 }
 0x108   : > { %2362 = vmatmul.msk.f32.gmra.mxu2 %vm201_vm1, %v2353_v31  ;;  %2378 = vmatmul.msk.f32.vlgmr.msrb.gmra.mxu3 %vm201_vm1, %v2372_v34  ;;  %v2420_v31 = vld [vmem:[%s3363_s1 + $0xe8] sm:$0xff] }
 0x109   : > { %2391 = vmatpush.msk.msra.mxu3 %vm208_vm0, %v1522_v36 }
 0x10d   : > { %v1512_v39 = vpop.permute.xlu1 %1511  ;;  %v1701_v41 = vpop.permute.xlu0 %1700 }
 0x10e   : > { %v1520_v42 = vsel %vm1519_vm8, %v1512_v39, %v1514_v26  ;;  %2367 = vmatmul.msk.f32.vlgmr.msrb.gmra.mxu0 %vm201_vm1, %v2350_v20  ;;  %2370 = vmatmul.msk.f32.vlgmr.msrb.gmra.mxu1 %vm201_vm1, %v2350_v20  ;;  %v1704_v43 = vsel %vm1018_vm6, %v1699_v30, %v1701_v41  ;;  %v1900_v44 = vpop.permute.xlu2 %1899 }
 0x10f   : > { %2385 = vmatpush.msk.msra.mxu1 %vm208_vm0, %v1520_v42  ;;  %v2430_v42 = vld [vmem:[%s3363_s1 + $0xf0] sm:$0xff] }
 0x110   : > { %2375 = vmatmul.msk.f32.vlgmr.msrb.gmra.mxu2 %vm201_vm1, %v2372_v34  ;;  %2379 = vmatmul.msk.f32.gmra.mxu3 %vm201_vm1, %v2373_v40 }
 0x111   : > { %2407 = vmatpush.msk.msrb.mxu2 %vm208_vm0, %v1704_v43 }
 0x115   : > { %v1794_v45 = vpop.permute.xlu1 %1793  ;;  %v1695_v47 = vpop.permute.xlu0 %1694 }
 0x116   : > { %v1801_v48 = vsel %vm508_vm4, %v1794_v45, %v1796_v38  ;;  %2368 = vmatmul.msk.f32.gmra.mxu0 %vm201_vm1, %v2351_v27  ;;  %2371 = vmatmul.msk.f32.gmra.mxu1 %vm201_vm1, %v2351_v27  ;;  %v1798_v50 = vpop.permute.xlu2 %1797 }
 0x117   : > { %2410 = vmatpush.msk.msrb.mxu3 %vm208_vm0, %v1801_v48  ;;  %v1802_v56 = vsel %vm508_vm4, %v1796_v38, %v1798_v50 }
 0x118   : > { %2376 = vmatmul.msk.f32.gmra.mxu2 %vm201_vm1, %v2373_v40  ;;  %2392 = vmatmul.msk.f32.vlgmr.msra.gmra.mxu3 %vm201_vm1, %v2383_v46 }
 0x11b   : > { %v232_v51 = vpop.f32.mrf.mxu0  ;;  %v3036_v52 = vpop.f32.mrf.mxu1 }
 0x11c   : > { %v3038_v53 = vadd.f32 %v321_v49, %v232_v51 }
 0x11d   : > { %v1697_v54 = vpop.permute.xlu1 %1696  ;;  %v1902_v57 = vpop.permute.xlu0 %1901 }
 0x11e   : > { %v1703_v58 = vsel %vm1018_vm6, %v1697_v54, %v1699_v30  ;;  %2381 = vmatmul.msk.f32.vlgmr.msra.gmra.mxu0 %vm201_vm1, %v2372_v34  ;;  %2386 = vmatmul.msk.f32.vlgmr.msra.gmra.mxu1 %vm201_vm1, %v2383_v46  ;;  %v1702_v59 = vsel %vm1018_vm6, %v1695_v47, %v1697_v54  ;;  %v1907_v60 = vsel %vm1519_vm8, %v1900_v44, %v1902_v57  ;;  %v2016_v63 = vpop.permute.xlu2 %2015 }
 0x11f   : > { %2404 = vmatpush.msk.msrb.mxu1 %vm208_vm0, %v1703_v58  ;;  %2401 = vmatpush.msk.msrb.mxu0 %vm208_vm0, %v1702_v59 }
 0x120   : > { %2389 = vmatmul.msk.f32.vlgmr.msra.gmra.mxu2 %vm201_vm1, %v2383_v46  ;;  %2393 = vmatmul.msk.f32.gmra.mxu3 %vm201_vm1, %v2384_v55 }
 0x121   : > { %2413 = vmatpush.msk.msra.mxu0 %vm208_vm0, %v1802_v56  ;;  %2421 = vmatpush.msk.msra.mxu2 %vm208_vm0, %v1907_v60  ;;  %v2431_v60 = vld [vmem:[%s3363_s1 + $0xf8] sm:$0xff] }
 0x122   : > { %v3055_v62 = vpop.f32.mrf.mxu2 }
 0x123   : > { %v235_v2 = vpop.f32.mrf.mxu0  ;;  %v3057_v3 = vpop.f32.mrf.mxu1 }
 0x124   : > { %v325_v32 = vadd.f32 %v324_v61, %v235_v2 }
 0x125   : > { %v1904_v4 = vpop.permute.xlu1 %1903  ;;  %v1800_v6 = vpop.permute.xlu0 %1799 }
 0x126   : > { %2382 = vmatmul.msk.f32.gmra.mxu0 %vm201_vm1, %v2373_v40  ;;  %2387 = vmatmul.msk.f32.gmra.mxu1 %vm201_vm1, %v2384_v55  ;;  %v1908_v8 = vsel %vm1519_vm8, %v1902_v57, %v1904_v4  ;;  %v1803_v10 = vsel %vm508_vm4, %v1798_v50, %v1800_v6  ;;  %v2012_v15 = vpop.permute.xlu2 %2011 }
 0x127   : > { %2424 = vmatpush.msk.msra.mxu3 %vm208_vm0, %v1908_v8  ;;  %2416 = vmatpush.msk.msra.mxu1 %vm208_vm0, %v1803_v10 }
 0x128   : > { %2390 = vmatmul.msk.f32.gmra.mxu2 %vm201_vm1, %v2384_v55  ;;  %2411 = vmatmul.msk.f32.vlgmr.msrb.gmra.mxu3 %vm201_vm1, %v2397_v5 }
 0x12a   : > { %v281_v11 = vpop.f32.mrf.mxu2  ;;  %v3070_v1 = vpop.f32.mrf.mxu3 }
 0x12b   : > { %v3072_v12 = vpop.f32.mrf.mxu0  ;;  %v3074_v13 = vpop.f32.mrf.mxu1 }
 0x12d   : > { %v2014_v16 = vpop.permute.xlu1 %2013  ;;  %v2018_v7 = vpop.permute.xlu0 %2017 }
 0x12e   : > { %2402 = vmatmul.msk.f32.vlgmr.msrb.gmra.mxu0 %vm201_vm1, %v2399_v14  ;;  %2405 = vmatmul.msk.f32.vlgmr.msrb.gmra.mxu1 %vm201_vm1, %v2399_v14  ;;  %v2021_v0 = vsel %vm2019_vm9, %v2014_v16, %v2016_v63  ;;  %v2022_v17 = vsel %vm2019_vm9, %v2016_v63, %v2018_v7  ;;  %v2020_v18 = vsel %vm2019_vm9, %v2012_v15, %v2014_v16 }
 0x12f   : > { %2438 = vmatpush.msk.msrb.mxu3 %vm208_vm0, %v2022_v17  ;;  %2432 = vmatpush.msk.msrb.mxu1 %vm208_vm0, %v2020_v18  ;;  %v368_v16 = vadd.f32 %v3074_v13, %v3055_v62  ;;  %v345_v13 = vadd.f32 %v3072_v12, %v3036_v52 }
 0x130   : > { %2408 = vmatmul.msk.f32.vlgmr.msrb.gmra.mxu2 %vm201_vm1, %v2399_v14  ;;  %2412 = vmatmul.msk.f32.gmra.mxu3 %vm201_vm1, %v2398_v9 }
 0x131   : > { %2435 = vmatpush.msk.msrb.mxu2 %vm208_vm0, %v2021_v0 }
 0x132   : > { %v3089_v19 = vpop.f32.mrf.mxu2 }
 0x133   : > { %v347_v20 = vpop.f32.mrf.mxu0  ;;  %v370_v21 = vpop.f32.mrf.mxu1 }
 0x134   : > { %v454_v23 = vpop.f32.mrf.mxu3  ;;  %v371_v33 = vadd.f32 %v370_v21, %v281_v11  ;;  %v348_v43 = vadd.f32 %v347_v20, %v3057_v3 }
 0x135   : > { %v1906_v24 = vpop.permute.xlu1 %1905  ;;  %v3116_v34 = vpop.permute.xlu0 %606 }
 0x136   : > { %v1909_v26 = vsel %vm1519_vm8, %v1904_v4, %v1906_v24  ;;  %2403 = vmatmul.msk.f32.gmra.mxu0 %vm201_vm1, %v2400_v22  ;;  %2406 = vmatmul.msk.f32.gmra.mxu1 %vm201_vm1, %v2400_v22  ;;  %v484_v48 = vadd.f32 %v454_v23, %v348_v43  ;;  %v480_v23 = vadd.f32 %v3089_v19, %v3038_v53 }
 0x137   : > { %2427 = vmatpush.msk.msrb.mxu0 %vm208_vm0, %v1909_v26 }
 0x138   : > { %2409 = vmatmul.msk.f32.gmra.mxu2 %vm201_vm1, %v2400_v22  ;;  %2425 = vmatmul.msk.f32.vlgmr.msra.gmra.mxu3 %vm201_vm1, %v2419_v25 }
 0x13a   : > { %v431_v27 = vpop.f32.mrf.mxu2 }
 0x13b   : > { %v3103_v28 = vpop.f32.mrf.mxu0  ;;  %v3105_v29 = vpop.f32.mrf.mxu1  ;;  %v483_v35 = vadd.f32 %v431_v27, %v325_v32 }
 0x13c   : > { %v3107_v30 = vpop.f32.mrf.mxu3  ;;  %v482_v18 = vadd.f32 %v3103_v28, %v368_v16 }
 0x13d   : > { %v3173_v27 = vpop.permute.xlu1 %601 }
 0x13e   : > { %2414 = vmatmul.msk.f32.vlgmr.msra.gmra.mxu0 %vm201_vm1, %v2397_v5  ;;  %2417 = vmatmul.msk.f32.vlgmr.msra.gmra.mxu1 %vm201_vm1, %v2397_v5  ;;  %v595_v28 = vadd.f32 %v3107_v30, %v482_v18 }
 0x140   : > { %2422 = vmatmul.msk.f32.vlgmr.msra.gmra.mxu2 %vm201_vm1, %v2419_v25  ;;  %2426 = vmatmul.msk.f32.gmra.mxu3 %vm201_vm1, %v2420_v31 }
 0x143   : > { %v3118_v36 = vpop.f32.mrf.mxu2  ;;  %v477_v37 = vpop.f32.mrf.mxu0 }
 0x144   : > { %v485_v38 = vadd.f32 %v477_v37, %v371_v33  ;;  %v544_v39 = vpop.f32.mrf.mxu1  ;;  %v590_v40 = vpop.f32.mrf.mxu3 }
 0x145   : > { %v596_v41 = vadd.f32 %v544_v39, %v483_v35 }
 0x146   : > { %v598_v44 = vadd.f32 %v590_v40, %v485_v38  ;;  %2415 = vmatmul.msk.f32.gmra.mxu0 %vm201_vm1, %v2398_v9  ;;  %2418 = vmatmul.msk.f32.gmra.mxu1 %vm201_vm1, %v2398_v9 }
 0x147   : > { %v612_v45 = vadd.f32 %v3116_v34, %v596_v41 }
 0x148   : > { %v614_v46 = vadd.f32 %v3116_v34, %v598_v44  ;;  %2423 = vmatmul.msk.f32.gmra.mxu2 %vm201_vm1, %v2420_v31  ;;  %2439 = vmatmul.msk.f32.vlgmr.msrb.gmra.mxu3 %vm201_vm1, %v2430_v42 }
 0x149   : > { %v615_v47 = vsub.f32 0.0, %v612_v45  ;;  %v611_v45 = vadd.f32 %v3173_v27, %v595_v28 }
 0x14a   : > { %v617_v49 = vsub.f32 0.0, %v614_v46 }
 0x14b   : > { %v618_v50 = vmul.f32 1.442695, %v615_v47  ;;  %v567_v51 = vpop.f32.mrf.mxu2  ;;  %v733_v54 = vpop.f32.mrf.mxu0 }
 0x14c   : > { %v622_v55 = vmul.f32 1.442695, %v617_v49  ;;  %v597_v56 = vadd.f32 %v567_v51, %v484_v48  ;;  %v3130_v57 = vpop.f32.mrf.mxu1  ;;  %v832_v58 = vpop.f32.mrf.mxu3 }
 0x14d   : > { %2502 = vpow2.f32 %v618_v50  ;;  %v3132_v59 = vadd.f32 %v832_v58, %v733_v54 }
 0x14e   : > { %2504 = vpow2.f32 %v622_v55  ;;  %v613_v61 = vadd.f32 %v3116_v34, %v597_v56  ;;  %2428 = vmatmul.msk.f32.vlgmr.msrb.gmra.mxu0 %vm201_vm1, %v2419_v25  ;;  %2433 = vmatmul.msk.f32.vlgmr.msrb.gmra.mxu1 %vm201_vm1, %v2430_v42  ;;  %v593_v25 = vadd.f32 %v3105_v29, %v480_v23  ;;  %v481_v29 = vadd.f32 %v3070_v1, %v345_v13 }
 0x150   : > { %v616_v63 = vsub.f32 0.0, %v613_v61  ;;  %2436 = vmatmul.msk.f32.vlgmr.msrb.gmra.mxu2 %vm201_vm1, %v2430_v42  ;;  %2440 = vmatmul.msk.f32.gmra.mxu3 %vm201_vm1, %v2431_v60  ;;  %v609_v37 = vadd.f32 %v3173_v27, %v593_v25  ;;  %v594_v50 = vadd.f32 %v3118_v36, %v481_v29 }
 0x152   : > { %v620_v2 = vmul.f32 1.442695, %v616_v63 }
 0x153   : > { %v2503_v3 = vpop.eup %2502  ;;  %v3142_v4 = vpop.f32.mrf.mxu2 }
 0x154   : > { %v3144_v5 = vpop.f32.mrf.mxu0  ;;  %v2505_v6 = vpop.eup %2504  ;;  %v624_v8 = vadd.f32 1.0, %v2503_v3  ;;  %2506 = vpow2.f32 %v620_v2  ;;  %v610_v3 = vadd.f32 %v3173_v27, %v594_v50 }
 0x155   : > { %v3146_v10 = vpop.f32.mrf.mxu1  ;;  %v3148_v11 = vpop.f32.mrf.mxu3  ;;  %v626_v14 = vadd.f32 1.0, %v2505_v6 }
 0x156   : > { %2508 = vrcp.f32 %v624_v8  ;;  %2429 = vmatmul.msk.f32.gmra.mxu0 %vm201_vm1, %v2420_v31  ;;  %2434 = vmatmul.msk.f32.gmra.mxu1 %vm201_vm1, %v2431_v60  ;;  %v638_v31 = vand.u32 2147483648, %v624_v8  ;;  %v636_v53 = vand.u32 2147483647, %v624_v8  ;;  %vm632_vm12 = vweird.f32 %v624_v8 }
 0x157   : > { %2510 = vrcp.f32 %v626_v14  ;;  %v666_v19 = vand.u32 2147483648, %v626_v14  ;;  %v664_v52 = vand.u32 2147483647, %v626_v14  ;;  %vm660_vm14 = vweird.f32 %v626_v14 }
 0x158   : > { %2437 = vmatmul.msk.f32.gmra.mxu2 %vm201_vm1, %v2431_v60  ;;  %v639_v40 = vor.u32 1.1754944e-38, %v638_v31  ;;  %vm637_vm15 = vcmp.eq.f32.partialorder %v636_v53, 8.507059e+37 }
 0x159   : > { %v667_v1 = vor.u32 1.1754944e-38, %v666_v19  ;;  %vm665_vm1 = vcmp.eq.f32.partialorder %v664_v52, 8.507059e+37 }
 0x15a   : > { %v2507_v15 = vpop.eup %2506 }
 0x15b   : > { %v3155_v9 = vadd.f32 1.0, %v2507_v15  ;;  %v3157_v7 = vpop.f32.mrf.mxu2 }
 0x15c   : > { %v3159_v0 = vpop.f32.mrf.mxu0  ;;  %v2509_v17 = vpop.eup %2508 }
 0x15d   : > { %v3162_v20 = vpop.f32.mrf.mxu1  ;;  %v3164_v21 = vpop.f32.mrf.mxu3  ;;  %v628_v24 = vmul.f32 %v2509_v17, %v624_v8  ;;  %2512 = vrcp.f32 %v3155_v9  ;;  %vm633_vm10 = vweird.f32 %v2509_v17  ;;  %v652_v55 = vand.u32 2147483648, %v3155_v9 }
 0x15e   : > { %v2511_v22 = vpop.eup %2510  ;;  %vm634_vm13 = vmor %vm632_vm12, %vm633_vm10  ;;  %v650_v60 = vand.u32 2147483647, %v3155_v9  ;;  %vm646_vm3 = vweird.f32 %v3155_v9 }
 0x15f   : > { %v656_v62 = vmul.f32 %v2511_v22, %v626_v14  ;;  %v629_v26 = vsub.f32 1.0, %v628_v24  ;;  %vm661_vm11 = vweird.f32 %v2511_v22  ;;  %v653_v36 = vor.u32 1.1754944e-38, %v652_v55 }
 0x160   : > { %vm662_vm0 = vmor %vm660_vm14, %vm661_vm11  ;;  %vm651_vm5 = vcmp.eq.f32.partialorder %v650_v60, 8.507059e+37 }
 0x161   : > { %v657_v32 = vsub.f32 1.0, %v656_v62  ;;  %v630_v33 = vmul.f32 %v2509_v17, %v629_v26 }
 0x163   : > { %v658_v35 = vmul.f32 %v2511_v22, %v657_v32  ;;  %v2513_v12 = vpop.eup %2512  ;;  %v631_v38 = vadd.f32 %v2509_v17, %v630_v33  ;;  %v3182_v30 = vpop.f32.mrf.mxu2 }
 0x164   : > { %v858_v39 = vpop.f32.mrf.mxu0  ;;  %v642_v42 = vmul.f32 %v2513_v12, %v3155_v9  ;;  %vm647_vm2 = vweird.f32 %v2513_v12 }
 0x165   : > { %v659_v41 = vadd.f32 %v2511_v22, %v658_v35  ;;  %v881_v43 = vpop.f32.mrf.mxu1  ;;  %v964_v44 = vpop.f32.mrf.mxu3  ;;  %v635_v46 = vsel %vm634_vm13, %v2509_v17, %v631_v38  ;;  %vm648_vm4 = vmor %vm646_vm3, %vm647_vm2  ;;  %v836_v17 = vadd.f32 %v3148_v11, %v3144_v5  ;;  %v859_v26 = vadd.f32 %v858_v39, %v3146_v10 }
 0x166   : > { %v640_v47 = vsel %vm637_vm15, %v639_v40, %v635_v46  ;;  %v643_v49 = vsub.f32 1.0, %v642_v42  ;;  %v882_v18 = vadd.f32 %v881_v43, %v3157_v7 }
 0x167   : > { %v663_v48 = vsel %vm662_vm0, %v2511_v22, %v659_v41  ;;  %v669_v51 = vmul.f32 %v640_v47, %v609_v37  ;;  %v994_v53 = vadd.f32 %v964_v44, %v859_v26 }
 0x168   : > { %v668_v54 = vsel %vm665_vm1, %v667_v1, %v663_v48  ;;  %v644_v58 = vmul.f32 %v2513_v12, %v643_v49  ;;  %v879_v48 = vadd.f32 %v3162_v20, %v3142_v4  ;;  %v856_v20 = vadd.f32 %v3159_v0, %v3130_v57 }
 0x169   : > { %v671_v56 = vmul.f32 %v668_v54, %v611_v45  ;;  %672 = vst [vmem:[%s3191_s4] sm:$0xff] %v669_v51 }
 0x16a   : > { %v645_v61 = vadd.f32 %v2513_v12, %v644_v58 }
 0x16b   : > { %674 = vst [vmem:[%s3191_s4 + $0x10] sm:$0xff] %v671_v56  ;;  %v941_v63 = vpop.f32.mrf.mxu2 }
 0x16c   : > { %v984_v2 = vpop.f32.mrf.mxu0  ;;  %v649_v6 = vsel %vm648_vm4, %v2513_v12, %v645_v61  ;;  %v993_v22 = vadd.f32 %v941_v63, %v836_v17  ;;  %v990_v61 = vadd.f32 %v3182_v30, %v3132_v59  ;;  %v991_v30 = vadd.f32 %v3164_v21, %v856_v20 }
 0x16d   : > { %v1051_v8 = vpop.f32.mrf.mxu1  ;;  %v1097_v14 = vpop.f32.mrf.mxu3  ;;  %v654_v15 = vsel %vm651_vm5, %v653_v36, %v649_v6  ;;  %v992_v55 = vadd.f32 %v984_v2, %v879_v48 }
 0x16e   : > { %v670_v16 = vmul.f32 %v654_v15, %v610_v3  ;;  %v1103_v63 = vadd.f32 %v1051_v8, %v990_v61 }
 0x16f   : > { %v1105_v6 = vadd.f32 %v1097_v14, %v992_v55 }
 0x170   : > { %673 = vst [vmem:[%s3191_s4 + $0x8] sm:$0xff] %v670_v16 }
 0x173   : > { %v3201_v9 = vpop.f32.mrf.mxu2 }
 0x174   : > { %v987_v23 = vpop.f32.mrf.mxu0 }
 0x175   : > { %v995_v24 = vadd.f32 %v987_v23, %v882_v18  ;;  %v1054_v62 = vpop.f32.mrf.mxu1  ;;  %v1100_v13 = vpop.f32.mrf.mxu3 }
 0x176   : > { %v1106_v25 = vadd.f32 %v1054_v62, %v993_v22 }
 0x177   : > { %v1108_v28 = vadd.f32 %v1100_v13, %v995_v24  ;;  %v1109_v24 = vadd.f32 %v1103_v63, %v3173_v27 }
 0x178   : > { %v1112_v31 = vadd.f32 %v1106_v25, %v3116_v34 }
 0x179   : > { %v1114_v32 = vadd.f32 %v1108_v28, %v3116_v34  ;;  %v1111_v28 = vadd.f32 %v1105_v6, %v3173_v27 }
 0x17a   : > { %v1115_v33 = vsub.f32 0.0, %v1112_v31 }
 0x17b   : > { %v1117_v5 = vsub.f32 0.0, %v1114_v32  ;;  %v1077_v7 = vpop.f32.mrf.mxu2 }
 0x17c   : > { %v1118_v11 = vmul.f32 1.442695, %v1115_v33  ;;  %v1233_v19 = vpop.f32.mrf.mxu0  ;;  %v1107_v52 = vadd.f32 %v1077_v7, %v994_v53 }
 0x17d   : > { %v1122_v35 = vmul.f32 1.442695, %v1117_v5  ;;  %v3206_v12 = vpop.f32.mrf.mxu1  ;;  %v1332_v29 = vpop.f32.mrf.mxu3  ;;  %v1104_v5 = vadd.f32 %v3201_v9, %v991_v30 }
 0x17e   : > { %2514 = vpow2.f32 %v1118_v11  ;;  %v3208_v37 = vadd.f32 %v1332_v29, %v1233_v19  ;;  %v1113_v10 = vadd.f32 %v1107_v52, %v3116_v34 }
 0x17f   : > { %2516 = vpow2.f32 %v1122_v35  ;;  %v1110_v9 = vadd.f32 %v1104_v5, %v3173_v27 }
 0x180   : > { %v1116_v38 = vsub.f32 0.0, %v1113_v10 }
 0x182   : > { %v1120_v39 = vmul.f32 1.442695, %v1116_v38 }
 0x183   : > { %v3211_v41 = vpop.f32.mrf.mxu2 }
 0x184   : > { %v2515_v40 = vpop.eup %2514  ;;  %v3213_v42 = vpop.f32.mrf.mxu0  ;;  %2518 = vpow2.f32 %v1120_v39 }
 0x185   : > { %v2517_v43 = vpop.eup %2516  ;;  %v1124_v44 = vadd.f32 1.0, %v2515_v40  ;;  %v3215_v45 = vpop.f32.mrf.mxu1 }
 0x186   : > { %v3217_v46 = vpop.f32.mrf.mxu3  ;;  %v1126_v1 = vadd.f32 1.0, %v2517_v43 }
 0x187   : > { %2520 = vrcp.f32 %v1124_v44  ;;  %v1138_v15 = vand.u32 2147483648, %v1124_v44  ;;  %v1136_v17 = vand.u32 2147483647, %v1124_v44  ;;  %vm1132_vm8 = vweird.f32 %v1124_v44 }
 0x188   : > { %2522 = vrcp.f32 %v1126_v1  ;;  %v1166_v18 = vand.u32 2147483648, %v1126_v1  ;;  %v1164_v23 = vand.u32 2147483647, %v1126_v1  ;;  %vm1160_vm10 = vweird.f32 %v1126_v1 }
 0x189   : > { %v1139_v8 = vor.u32 1.1754944e-38, %v1138_v15  ;;  %vm1137_vm11 = vcmp.eq.f32.partialorder %v1136_v17, 8.507059e+37 }
 0x18a   : > { %v2519_v47 = vpop.eup %2518  ;;  %v1167_v21 = vor.u32 1.1754944e-38, %v1166_v18  ;;  %vm1165_vm13 = vcmp.eq.f32.partialorder %v1164_v23, 8.507059e+37 }
 0x18b   : > { %v3221_v49 = vadd.f32 1.0, %v2519_v47  ;;  %v3223_v50 = vpop.f32.mrf.mxu2 }
 0x18c   : > { %v3225_v51 = vpop.f32.mrf.mxu0 }
 0x18d   : > { %v2521_v54 = vpop.eup %2520  ;;  %v3227_v56 = vpop.f32.mrf.mxu1  ;;  %2524 = vrcp.f32 %v3221_v49  ;;  %v1152_v19 = vand.u32 2147483648, %v3221_v49  ;;  %v1150_v29 = vand.u32 2147483647, %v3221_v49  ;;  %vm1146_vm15 = vweird.f32 %v3221_v49 }
 0x18e   : > { %v3229_v58 = vpop.f32.mrf.mxu3  ;;  %v2523_v60 = vpop.eup %2522  ;;  %v1128_v36 = vmul.f32 %v2521_v54, %v1124_v44  ;;  %vm1133_vm6 = vweird.f32 %v2521_v54 }
 0x18f   : > { %v1156_v4 = vmul.f32 %v2523_v60, %v1126_v1  ;;  %vm1161_vm7 = vweird.f32 %v2523_v60  ;;  %vm1134_vm9 = vmor %vm1132_vm8, %vm1133_vm6  ;;  %v1153_v38 = vor.u32 1.1754944e-38, %v1152_v19  ;;  %vm1151_vm1 = vcmp.eq.f32.partialorder %v1150_v29, 8.507059e+37 }
 0x190   : > { %v1129_v3 = vsub.f32 1.0, %v1128_v36  ;;  %vm1162_vm12 = vmor %vm1160_vm10, %vm1161_vm7 }
 0x191   : > { %v1157_v2 = vsub.f32 1.0, %v1156_v4 }
 0x192   : > { %v1130_v16 = vmul.f32 %v2521_v54, %v1129_v3 }
 0x193   : > { %v1158_v22 = vmul.f32 %v2523_v60, %v1157_v2  ;;  %v2525_v59 = vpop.eup %2524  ;;  %v3238_v57 = vpop.f32.mrf.mxu2 }
 0x194   : > { %v1131_v62 = vadd.f32 %v2521_v54, %v1130_v16  ;;  %v1358_v0 = vpop.f32.mrf.mxu0  ;;  %v1142_v13 = vmul.f32 %v2525_v59, %v3221_v49  ;;  %vm1147_vm14 = vweird.f32 %v2525_v59 }
 0x195   : > { %v1159_v14 = vadd.f32 %v2523_v60, %v1158_v22  ;;  %v1381_v25 = vpop.f32.mrf.mxu1  ;;  %vm1148_vm0 = vmor %vm1146_vm15, %vm1147_vm14  ;;  %v1359_v3 = vadd.f32 %v1358_v0, %v3215_v45 }
 0x196   : > { %v1465_v26 = vpop.f32.mrf.mxu3  ;;  %v1135_v31 = vsel %vm1134_vm9, %v2521_v54, %v1131_v62  ;;  %v1143_v53 = vsub.f32 1.0, %v1142_v13  ;;  %v1336_v54 = vadd.f32 %v3217_v46, %v3213_v42  ;;  %v1382_v55 = vadd.f32 %v1381_v25, %v3223_v50 }
 0x197   : > { %v1140_v32 = vsel %vm1137_vm11, %v1139_v8, %v1135_v31  ;;  %v1163_v33 = vsel %vm1162_vm12, %v2523_v60, %v1159_v14  ;;  %v1495_v17 = vadd.f32 %v1465_v26, %v1359_v3 }
 0x198   : > { %v1169_v11 = vmul.f32 %v1140_v32, %v1109_v24  ;;  %v1168_v7 = vsel %vm1165_vm13, %v1167_v21, %v1163_v33  ;;  %v1144_v52 = vmul.f32 %v2525_v59, %v1143_v53  ;;  %v1379_v33 = vadd.f32 %v3227_v56, %v3211_v41 }
 0x199   : > { %v1171_v35 = vmul.f32 %v1168_v7, %v1111_v28  ;;  %v1356_v56 = vadd.f32 %v3225_v51, %v3206_v12 }
 0x19a   : > { %2347 = vst [vmem:[%s3191_s4 + $0x18] sm:$0xff] %v1169_v11  ;;  %v1145_v10 = vadd.f32 %v2525_v59, %v1144_v52 }
 0x19b   : > { %2349 = vst [vmem:[%s3191_s4 + $0x28] sm:$0xff] %v1171_v35  ;;  %v1442_v39 = vpop.f32.mrf.mxu2 }
 0x19c   : > { %v1485_v40 = vpop.f32.mrf.mxu0  ;;  %v1149_v43 = vsel %vm1148_vm0, %v2525_v59, %v1145_v10  ;;  %v1494_v60 = vadd.f32 %v1442_v39, %v1336_v54  ;;  %v1491_v10 = vadd.f32 %v3238_v57, %v3208_v37  ;;  %v1492_v57 = vadd.f32 %v3229_v58, %v1356_v56 }
 0x19d   : > { %v1552_v44 = vpop.f32.mrf.mxu1  ;;  %v1154_v47 = vsel %vm1151_vm1, %v1153_v38, %v1149_v43  ;;  %v1493_v19 = vadd.f32 %v1485_v40, %v1379_v33 }
 0x19e   : > { %v1598_v1 = vpop.f32.mrf.mxu3  ;;  %v1170_v48 = vmul.f32 %v1154_v47, %v1110_v9  ;;  %v1604_v39 = vadd.f32 %v1552_v44, %v1491_v10 }
 0x19f   : > { %v1606_v43 = vadd.f32 %v1598_v1, %v1493_v19 }
 0x1a0   : > { %2348 = vst [vmem:[%s3191_s4 + $0x20] sm:$0xff] %v1170_v48 }
 0x1a3   : > { %v3254_v49 = vpop.f32.mrf.mxu2 }
 0x1a4   : > { %v1488_v61 = vpop.f32.mrf.mxu0 }
 0x1a5   : > { %v1496_v36 = vadd.f32 %v1488_v61, %v1382_v55  ;;  %v1555_v4 = vpop.f32.mrf.mxu1 }
 0x1a6   : > { %v1601_v20 = vpop.f32.mrf.mxu3  ;;  %v1607_v63 = vadd.f32 %v1555_v4, %v1494_v60 }
 0x1a7   : > { %v1609_v6 = vadd.f32 %v1601_v20, %v1496_v36  ;;  %v1610_v36 = vadd.f32 %v1604_v39, %v3173_v27 }
 0x1a8   : > { %v1613_v15 = vadd.f32 %v1607_v63, %v3116_v34 }
 0x1a9   : > { %v1615_v2 = vadd.f32 %v1609_v6, %v3116_v34  ;;  %v1612_v6 = vadd.f32 %v1606_v43, %v3173_v27 }
 0x1aa   : > { %v1616_v16 = vsub.f32 0.0, %v1613_v15 }
 0x1ab   : > { %v1618_v42 = vsub.f32 0.0, %v1615_v2  ;;  %v1578_v50 = vpop.f32.mrf.mxu2 }
 0x1ac   : > { %v1619_v46 = vmul.f32 1.442695, %v1616_v16  ;;  %v1734_v18 = vpop.f32.mrf.mxu0  ;;  %v1608_v23 = vadd.f32 %v1578_v50, %v1495_v17 }
 0x1ad   : > { %v1623_v22 = vmul.f32 1.442695, %v1618_v42  ;;  %v3259_v59 = vpop.f32.mrf.mxu1  ;;  %v1605_v42 = vadd.f32 %v3254_v49, %v1492_v57 }
 0x1ae   : > { %v1833_v30 = vpop.f32.mrf.mxu3  ;;  %2526 = vpow2.f32 %v1619_v46  ;;  %v1614_v45 = vadd.f32 %v1608_v23, %v3116_v34 }
 0x1af   : > { %v3261_v24 = vadd.f32 %v1833_v30, %v1734_v18  ;;  %2528 = vpow2.f32 %v1623_v22  ;;  %v1611_v49 = vadd.f32 %v1605_v42, %v3173_v27 }
 0x1b0   : > { %v1617_v62 = vsub.f32 0.0, %v1614_v45 }
 0x1b2   : > { %v1621_v0 = vmul.f32 1.442695, %v1617_v62 }
 0x1b3   : > { %v3264_v14 = vpop.f32.mrf.mxu2 }
 0x1b4   : > { %v2527_v8 = vpop.eup %2526  ;;  %v3266_v13 = vpop.f32.mrf.mxu0  ;;  %2530 = vpow2.f32 %v1621_v0 }
 0x1b5   : > { %v2529_v25 = vpop.eup %2528  ;;  %v1625_v26 = vadd.f32 1.0, %v2527_v8  ;;  %v3268_v28 = vpop.f32.mrf.mxu1 }
 0x1b6   : > { %v3270_v31 = vpop.f32.mrf.mxu3  ;;  %v1627_v21 = vadd.f32 1.0, %v2529_v25 }
 0x1b7   : > { %2532 = vrcp.f32 %v1625_v26  ;;  %v1639_v47 = vand.u32 2147483648, %v1625_v26  ;;  %v1637_v54 = vand.u32 2147483647, %v1625_v26  ;;  %vm1633_vm4 = vweird.f32 %v1625_v26 }
 0x1b8   : > { %2534 = vrcp.f32 %v1627_v21  ;;  %v1667_v55 = vand.u32 2147483648, %v1627_v21  ;;  %v1665_v61 = vand.u32 2147483647, %v1627_v21  ;;  %vm1661_vm6 = vweird.f32 %v1627_v21 }
 0x1b9   : > { %v1640_v44 = vor.u32 1.1754944e-38, %v1639_v47  ;;  %vm1638_vm7 = vcmp.eq.f32.partialorder %v1637_v54, 8.507059e+37 }
 0x1ba   : > { %v2531_v32 = vpop.eup %2530  ;;  %v1668_v58 = vor.u32 1.1754944e-38, %v1667_v55  ;;  %vm1666_vm9 = vcmp.eq.f32.partialorder %v1665_v61, 8.507059e+37 }
 0x1bb   : > { %v3274_v53 = vadd.f32 1.0, %v2531_v32  ;;  %v3276_v5 = vpop.f32.mrf.mxu2 }
 0x1bc   : > { %v3278_v11 = vpop.f32.mrf.mxu0 }
 0x1bd   : > { %v2533_v7 = vpop.eup %2532  ;;  %v3280_v35 = vpop.f32.mrf.mxu1  ;;  %2536 = vrcp.f32 %v3274_v53  ;;  %v1653_v18 = vand.u32 2147483648, %v3274_v53  ;;  %v1651_v30 = vand.u32 2147483647, %v3274_v53  ;;  %vm1647_vm11 = vweird.f32 %v3274_v53 }
 0x1be   : > { %v3282_v52 = vpop.f32.mrf.mxu3  ;;  %v2535_v29 = vpop.eup %2534  ;;  %v1629_v38 = vmul.f32 %v2533_v7, %v1625_v26  ;;  %vm1634_vm2 = vweird.f32 %v2533_v7 }
 0x1bf   : > { %v1657_v41 = vmul.f32 %v2535_v29, %v1627_v21  ;;  %vm1662_vm3 = vweird.f32 %v2535_v29  ;;  %vm1635_vm5 = vmor %vm1633_vm4, %vm1634_vm2  ;;  %v1654_v62 = vor.u32 1.1754944e-38, %v1653_v18  ;;  %vm1652_vm13 = vcmp.eq.f32.partialorder %v1651_v30, 8.507059e+37 }
 0x1c0   : > { %v1630_v9 = vsub.f32 1.0, %v1629_v38  ;;  %vm1663_vm8 = vmor %vm1661_vm6, %vm1662_vm3 }
 0x1c1   : > { %v1658_v40 = vsub.f32 1.0, %v1657_v41 }
 0x1c2   : > { %v1631_v48 = vmul.f32 %v2533_v7, %v1630_v9 }
 0x1c3   : > { %v1659_v60 = vmul.f32 %v2535_v29, %v1658_v40  ;;  %v2537_v37 = vpop.eup %2536  ;;  %v3291_v12 = vpop.f32.mrf.mxu2 }
 0x1c4   : > { %v1632_v4 = vadd.f32 %v2533_v7, %v1631_v48  ;;  %v1859_v51 = vpop.f32.mrf.mxu0  ;;  %v1643_v20 = vmul.f32 %v2537_v37, %v3274_v53  ;;  %vm1648_vm10 = vweird.f32 %v2537_v37 }
 0x1c5   : > { %v1660_v1 = vadd.f32 %v2535_v29, %v1659_v60  ;;  %v1882_v63 = vpop.f32.mrf.mxu1  ;;  %vm1649_vm12 = vmor %vm1647_vm11, %vm1648_vm10  ;;  %v1860_v9 = vadd.f32 %v1859_v51, %v3268_v28 }
 0x1c6   : > { %v1965_v3 = vpop.f32.mrf.mxu3  ;;  %v1636_v15 = vsel %vm1635_vm5, %v2533_v7, %v1632_v4  ;;  %v1644_v17 = vsub.f32 1.0, %v1643_v20  ;;  %v1837_v7 = vadd.f32 %v3270_v31, %v3266_v13  ;;  %v1883_v19 = vadd.f32 %v1882_v63, %v3276_v5 }
 0x1c7   : > { %v1641_v2 = vsel %vm1638_vm7, %v1640_v44, %v1636_v15  ;;  %v1664_v16 = vsel %vm1663_vm8, %v2535_v29, %v1660_v1  ;;  %v1995_v54 = vadd.f32 %v1965_v3, %v1860_v9  ;;  %v1880_v1 = vadd.f32 %v3280_v35, %v3264_v14 }
 0x1c8   : > { %v1670_v46 = vmul.f32 %v1641_v2, %v1610_v36  ;;  %v1669_v50 = vsel %vm1666_vm9, %v1668_v58, %v1664_v16  ;;  %v1645_v23 = vmul.f32 %v2537_v37, %v1644_v17  ;;  %v1857_v2 = vadd.f32 %v3278_v11, %v3259_v59 }
 0x1c9   : > { %v1672_v22 = vmul.f32 %v1669_v50, %v1612_v6 }
 0x1ca   : > { %2394 = vst [vmem:[%s3191_s4 + $0x30] sm:$0xff] %v1670_v46  ;;  %v1646_v45 = vadd.f32 %v2537_v37, %v1645_v23 }
 0x1cb   : > { %2396 = vst [vmem:[%s3191_s4 + $0x40] sm:$0xff] %v1672_v22  ;;  %v1942_v0 = vpop.f32.mrf.mxu2 }
 0x1cc   : > { %v1985_v8 = vpop.f32.mrf.mxu0  ;;  %v1650_v25 = vsel %vm1649_vm12, %v2537_v37, %v1646_v45  ;;  %v1994_v29 = vadd.f32 %v1942_v0, %v1837_v7 }
 0x1cd   : > { %v2052_v26 = vpop.f32.mrf.mxu1  ;;  %v1655_v32 = vsel %vm1652_vm13, %v1654_v62, %v1650_v25  ;;  %v1993_v3 = vadd.f32 %v1985_v8, %v1880_v1 }
 0x1ce   : > { %v2098_v21 = vpop.f32.mrf.mxu3  ;;  %v1671_v33 = vmul.f32 %v1655_v32, %v1611_v49 }
 0x1cf   : > { %v2106_v42 = vadd.f32 %v2098_v21, %v1993_v3 }
 0x1d0   : > { %2395 = vst [vmem:[%s3191_s4 + $0x38] sm:$0xff] %v1671_v33 }
 0x1d1   : > { %v2112_v0 = vadd.f32 %v2106_v42, %v3173_v27 }
 0x1d3   : > { %v3307_v53 = vpop.f32.mrf.mxu2 }
 0x1d4   : > { %v1988_v10 = vpop.f32.mrf.mxu0 }
 0x1d5   : > { %v1996_v38 = vadd.f32 %v1988_v10, %v1883_v19  ;;  %v2055_v41 = vpop.f32.mrf.mxu1 }
 0x1d6   : > { %v2101_v56 = vpop.f32.mrf.mxu3  ;;  %v2107_v39 = vadd.f32 %v2055_v41, %v1994_v29 }
 0x1d7   : > { %v2109_v43 = vadd.f32 %v2101_v56, %v1996_v38 }
 0x1d8   : > { %v2113_v47 = vadd.f32 %v2107_v39, %v3116_v34 }
 0x1d9   : > { %v2115_v40 = vadd.f32 %v2109_v43, %v3116_v34 }
 0x1da   : > { %v2116_v48 = vsub.f32 0.0, %v2113_v47 }
 0x1db   : > { %v2118_v13 = vsub.f32 0.0, %v2115_v40  ;;  %v2078_v5 = vpop.f32.mrf.mxu2 }
 0x1dc   : > { %v2119_v31 = vmul.f32 1.442695, %v2116_v48  ;;  %v2108_v60 = vadd.f32 %v2078_v5, %v1995_v54 }
 0x1dd   : > { %v2123_v55 = vmul.f32 1.442695, %v2118_v13 }
 0x1de   : > { %2538 = vpow2.f32 %v2119_v31  ;;  %v2114_v61 = vadd.f32 %v2108_v60, %v3116_v34  ;;  %v1991_v34 = vadd.f32 %v3291_v12, %v3261_v24  ;;  %v1992_v12 = vadd.f32 %v3282_v52, %v1857_v2 }
 0x1df   : > { %2540 = vpow2.f32 %v2123_v55 }
 0x1e0   : > { %v2117_v37 = vsub.f32 0.0, %v2114_v61  ;;  %v2104_v16 = vadd.f32 %v2052_v26, %v1991_v34  ;;  %v2105_v21 = vadd.f32 %v3307_v53, %v1992_v12 }
 0x1e2   : > { %v2121_v57 = vmul.f32 1.442695, %v2117_v37  ;;  %v2110_v30 = vadd.f32 %v2104_v16, %v3173_v27  ;;  %v2111_v41 = vadd.f32 %v2105_v21, %v3173_v27 }
 0x1e4   : > { %v2539_v36 = vpop.eup %2538  ;;  %2542 = vpow2.f32 %v2121_v57 }
 0x1e5   : > { %v2541_v28 = vpop.eup %2540  ;;  %v2125_v4 = vadd.f32 1.0, %v2539_v36 }
 0x1e6   : > { %v2127_v51 = vadd.f32 1.0, %v2541_v28 }
 0x1e7   : > { %2544 = vrcp.f32 %v2125_v4  ;;  %v2139_v46 = vand.u32 2147483648, %v2125_v4  ;;  %v2137_v35 = vand.u32 2147483647, %v2125_v4  ;;  %vm2133_vm0 = vweird.f32 %v2125_v4 }
 0x1e8   : > { %2546 = vrcp.f32 %v2127_v51  ;;  %v2167_v18 = vand.u32 2147483648, %v2127_v51  ;;  %v2165_v23 = vand.u32 2147483647, %v2127_v51  ;;  %vm2161_vm2 = vweird.f32 %v2127_v51 }
 0x1e9   : > { %v2140_v59 = vor.u32 1.1754944e-38, %v2139_v46  ;;  %vm2138_vm3 = vcmp.eq.f32.partialorder %v2137_v35, 8.507059e+37 }
 0x1ea   : > { %v2543_v44 = vpop.eup %2542  ;;  %v2168_v49 = vor.u32 1.1754944e-38, %v2167_v18  ;;  %vm2166_vm5 = vcmp.eq.f32.partialorder %v2165_v23, 8.507059e+37 }
 0x1eb   : > { %v2126_v20 = vadd.f32 1.0, %v2543_v44 }
 0x1ed   : > { %v2545_v63 = vpop.eup %2544  ;;  %2548 = vrcp.f32 %v2126_v20  ;;  %v2153_v7 = vand.u32 2147483648, %v2126_v20  ;;  %v2151_v10 = vand.u32 2147483647, %v2126_v20  ;;  %vm2147_vm7 = vweird.f32 %v2126_v20 }
 0x1ee   : > { %v2547_v6 = vpop.eup %2546  ;;  %v2129_v15 = vmul.f32 %v2545_v63, %v2125_v4  ;;  %vm2134_vm14 = vweird.f32 %v2545_v63 }
 0x1ef   : > { %v2157_v58 = vmul.f32 %v2547_v6, %v2127_v51  ;;  %vm2162_vm15 = vweird.f32 %v2547_v6  ;;  %vm2135_vm1 = vmor %vm2133_vm0, %vm2134_vm14  ;;  %v2154_v53 = vor.u32 1.1754944e-38, %v2153_v7  ;;  %vm2152_vm9 = vcmp.eq.f32.partialorder %v2151_v10, 8.507059e+37 }
 0x1f0   : > { %v2130_v17 = vsub.f32 1.0, %v2129_v15  ;;  %vm2163_vm4 = vmor %vm2161_vm2, %vm2162_vm15 }
 0x1f1   : > { %v2158_v50 = vsub.f32 1.0, %v2157_v58 }
 0x1f2   : > { %v2131_v14 = vmul.f32 %v2545_v63, %v2130_v17 }
 0x1f3   : > { %v2159_v22 = vmul.f32 %v2547_v6, %v2158_v50  ;;  %v2549_v24 = vpop.eup %2548 }
 0x1f4   : > { %v2132_v45 = vadd.f32 %v2545_v63, %v2131_v14  ;;  %v2143_v62 = vmul.f32 %v2549_v24, %v2126_v20  ;;  %vm2148_vm6 = vweird.f32 %v2549_v24 }
 0x1f5   : > { %v2160_v11 = vadd.f32 %v2547_v6, %v2159_v22  ;;  %vm2149_vm8 = vmor %vm2147_vm7, %vm2148_vm6 }
 0x1f6   : > { %v2136_v8 = vsel %vm2135_vm1, %v2545_v63, %v2132_v45  ;;  %v2144_v26 = vsub.f32 1.0, %v2143_v62 }
 0x1f7   : > { %v2141_v52 = vsel %vm2138_vm3, %v2140_v59, %v2136_v8  ;;  %v2164_v25 = vsel %vm2163_vm4, %v2547_v6, %v2160_v11 }
 0x1f8   : > { %v2170_v32 = vmul.f32 %v2141_v52, %v2110_v30  ;;  %v2169_v33 = vsel %vm2166_vm5, %v2168_v49, %v2164_v25  ;;  %v2145_v29 = vmul.f32 %v2549_v24, %v2144_v26 }
 0x1f9   : > { %v2172_v19 = vmul.f32 %v2169_v33, %v2112_v0 }
 0x1fa   : > { %2441 = vst [vmem:[%s3191_s4 + $0x48] sm:$0xff] %v2170_v32  ;;  %v2146_v38 = vadd.f32 %v2549_v24, %v2145_v29 }
 0x1fb   : > { %2443 = vst [vmem:[%s3191_s4 + $0x58] sm:$0xff] %v2172_v19 }
 0x1fc   : > { %v2150_v56 = vsel %vm2149_vm8, %v2549_v24, %v2146_v38 }
 0x1fd   : > { %v2155_v39 = vsel %vm2152_vm9, %v2154_v53, %v2150_v56 }
 0x1fe   : > { %v2171_v9 = vmul.f32 %v2155_v39, %v2111_v41 }
 0x200   : > { %2442 = vst [vmem:[%s3191_s4 + $0x50] sm:$0xff] %v2171_v9 }
 0x201   : > { %2577 = shalt.err (!%p2574_p3)
}
 0x202   : > { %s2623_s5 = smov 384   ;;  %s2624_s6 = smov 24  }
 0x203   : > { %2450 = dma.vmem_to_hbm [thread:$0]  (%p2683_p5), %s2191_s17, 1536, %s2193_s19, %s2178_s20, %s2623_s5, %s2623_s5, %s2624_s6  }
 0x204 PF: > { %p2456_p4 = scmp.ge.s32.totalorder %s2612_s15, 2  ;;  %s2207_s7 = sand.u32 1, %s2600_s12  }
 0x205   : > { %s2208_s8 = scalar_lea.sflag [#allocation3], %s2207_s7 }
 0x206   : > { %p2453_p7 = pnand %p2456_p4, %p2687_p6 }
 0x208   : > { %p2454_p8 = pneg %p2453_p7 }
 0x20a   : > { %2595 = dma.done.wait (%p2454_p8), %s2208_s8, 1536  }
 0x20b   : > { %2597 = vsyncadd (%p2454_p8), %s2208_s8, 4294965760  ;;  %p13_p9 = scmp.ge.s32.totalorder %s2670_s18, 4   ;;  %s3368_s12 = smov %s2604_s13 }
 0x20c   : > { %s3369_s13 = smov %s2608_s14  ;;  %s3370_s14 = smov %s2681_s21 }
 0x20d   : > { %s3371_s15 = smov %s2670_s18  ;;  %15 = sbr.rel (!%p13_p9) target bundleno = 3 (0x3), region = 101 }
 0x212   :  { %2214 = vsyncpa [#allocation3], 1 }
 0x213   :  { %2216 = vsyncpa [#allocation3 + $0x1], 1 }

</bundles_post_ra>
